<compile_context>
chip_gen: v7x
topology: tpu7x:2x2x1
jax: 0.10.0
libtpu: 0.0.40
codegen_flags: <defaults>
</compile_context>

<pallas_src>
import numpy as np
import jax
import jax.numpy as jnp
from jax import lax
from jax.experimental import pallas as pl
from jax.experimental.pallas import tpu as pltpu

# ----------------------------------------------------------------------------- config
HIDDEN = [8, 16]
LATENT = 32
IN_CH = 1
IMG = 16
BATCH = 2
FINAL_SIZE = IMG // (2 ** len(HIDDEN))          # 4
FINAL_CH = HIDDEN[-1]                           # 16
FLAT = FINAL_CH * FINAL_SIZE * FINAL_SIZE       # 256
BN_EPS = 1e-5


def _full_spec(shape):
    zeros = (0,) * len(shape)
    return pl.BlockSpec(tuple(shape), lambda i: zeros)


# ----------------------------------------------------------------------------- weight pre-composition (init time)

def _compose_conv(w, h, wid):
    """Conv2d(k=3, s=2, p=1) as a dense per-image matrix.
    w: (Cout, Cin, 3, 3) numpy.  Returns (Cin*h*wid, Cout*(h//2)*(wid//2))."""
    cout, cin = w.shape[0], w.shape[1]
    oh, ow = h // 2, wid // 2
    M = np.zeros((cin, h * wid, cout, oh * ow), np.float32)
    for kh in range(3):
        for kw in range(3):
            wt = np.asarray(w[:, :, kh, kw]).T              # (Cin, Cout)
            for r in range(oh):
                ih = 2 * r - 1 + kh
                if not (0 <= ih < h):
                    continue
                for c in range(ow):
                    iw = 2 * c - 1 + kw
                    if 0 <= iw < wid:
                        M[:, ih * wid + iw, :, r * ow + c] += wt
    return M.reshape(cin * h * wid, cout * oh * ow)


def _compose_convT(w, h, wid):
    """ConvTranspose2d(k=3, s=2, p=1, op=1) as a dense per-image matrix.
    w: (Cin, Cout, 3, 3) numpy.  Returns (Cin*h*wid, Cout*2h*2wid)."""
    cin, cout = w.shape[0], w.shape[1]
    oh, ow = 2 * h, 2 * wid
    M = np.zeros((cin, h * wid, cout, oh * ow), np.float32)
    for kh in range(3):
        for kw in range(3):
            wt = np.asarray(w[:, :, kh, kw])                # (Cin, Cout)
            for r in range(h):
                orr = 2 * r - 1 + kh
                if not (0 <= orr < oh):
                    continue
                for c in range(wid):
                    occ = 2 * c - 1 + kw
                    if 0 <= occ < ow:
                        M[:, r * wid + c, :, orr * ow + occ] += wt
    return M.reshape(cin * h * wid, cout * oh * ow)


def _bn_mats(c, hw):
    """0/1 channel-reduce (C*HW, C) and channel-broadcast (C, C*HW) matrices (exact in bf16)."""
    R = np.zeros((c * hw, c), np.float32)
    B = np.zeros((c, c * hw), np.float32)
    for ch in range(c):
        R[ch * hw:(ch + 1) * hw, ch] = 1.0
        B[ch, ch * hw:(ch + 1) * hw] = 1.0
    return R, B


# ----------------------------------------------------------------------------- params

def init_raw_params(key):
    """PyTorch-shaped weights (also used by the pure-JAX reference check)."""
    def nrm(k, shape, scale=0.05):
        return scale * jax.random.normal(k, shape, dtype=jnp.float32)

    ks = iter(jax.random.split(key, 32))
    raw = {"enc": [], "dec": []}
    in_c = IN_CH
    for hdim in HIDDEN:
        raw["enc"].append(dict(
            w=nrm(next(ks), (hdim, in_c, 3, 3)),          # Conv2d: (Cout, Cin, kh, kw)
            b=nrm(next(ks), (hdim,), 0.01),
            gamma=jnp.ones((hdim,), jnp.float32),
            beta=jnp.zeros((hdim,), jnp.float32)))
        in_c = hdim
    raw["fc_mean_w"] = nrm(next(ks), (LATENT, FLAT))
    raw["fc_mean_b"] = nrm(next(ks), (LATENT,), 0.01)
    raw["fc_logvar_w"] = nrm(next(ks), (LATENT, FLAT))
    raw["fc_logvar_b"] = nrm(next(ks), (LATENT,), 0.01)
    raw["dec_fc_w"] = nrm(next(ks), (FLAT, LATENT))
    raw["dec_fc_b"] = nrm(next(ks), (FLAT,), 0.01)
    rev = HIDDEN[::-1]
    for i in range(len(rev)):
        out_c = IN_CH if i == len(rev) - 1 else rev[i + 1]
        layer = dict(w=nrm(next(ks), (rev[i], out_c, 3, 3)),  # ConvTranspose2d: (Cin, Cout, kh, kw)
                     b=nrm(next(ks), (out_c,), 0.01))
        if i != len(rev) - 1:
            layer["gamma"] = jnp.ones((out_c,), jnp.float32)
            layer["beta"] = jnp.zeros((out_c,), jnp.float32)
        raw["dec"].append(layer)
    return raw


def pack_params(raw):
    """Pre-pack everything into kernel-ready layouts (once, outside the forward path)."""
    p = {}
    # encoder conv layers
    h = IMG
    for i, layer in enumerate(raw["enc"], start=1):
        cout = layer["w"].shape[0]
        hw_out = (h // 2) * (h // 2)
        p[f"enc{i}_m"] = jnp.asarray(_compose_conv(np.asarray(layer["w"]), h, h), jnp.bfloat16)
        p[f"enc{i}_b"] = jnp.asarray(np.repeat(np.asarray(layer["b"]), hw_out)[None, :], jnp.float32)
        R, B = _bn_mats(cout, hw_out)
        p[f"enc{i}_r"] = jnp.asarray(R, jnp.bfloat16)
        p[f"enc{i}_bc"] = jnp.asarray(B, jnp.bfloat16)
        p[f"enc{i}_g"] = layer["gamma"].reshape(1, cout)
        p[f"enc{i}_bt"] = layer["beta"].reshape(1, cout)
        h //= 2
    # latent head: fc_mean | fc_logvar fused into one (FLAT, 2*LATENT) matrix
    p["fc_ml_w"] = jnp.asarray(
        jnp.concatenate([raw["fc_mean_w"].T, raw["fc_logvar_w"].T], axis=1), jnp.bfloat16)
    p["fc_ml_b"] = jnp.concatenate([raw["fc_mean_b"], raw["fc_logvar_b"]]).reshape(1, 2 * LATENT)
    p["dec_fc_w"] = jnp.asarray(raw["dec_fc_w"].T, jnp.bfloat16)          # (LATENT, FLAT)
    p["dec_fc_b"] = raw["dec_fc_b"].reshape(1, FLAT)
    # decoder conv-transpose layers
    h = FINAL_SIZE
    for i, layer in enumerate(raw["dec"], start=1):
        cout = layer["w"].shape[1]
        hw_out = (2 * h) * (2 * h)
        p[f"dec{i}_m"] = jnp.asarray(_compose_convT(np.asarray(layer["w"]), h, h), jnp.bfloat16)
        p[f"dec{i}_b"] = jnp.asarray(np.repeat(np.asarray(layer["b"]), hw_out)[None, :], jnp.float32)
        if "gamma" in layer:
            R, B = _bn_mats(cout, hw_out)
            p[f"dec{i}_r"] = jnp.asarray(R, jnp.bfloat16)
            p[f"dec{i}_bc"] = jnp.asarray(B, jnp.bfloat16)
            p[f"dec{i}_g"] = layer["gamma"].reshape(1, cout)
            p[f"dec{i}_bt"] = layer["beta"].reshape(1, cout)
        h *= 2
    return p


# ----------------------------------------------------------------------------- in-kernel building blocks

def _affine(a, m_ref, b_ref):
    """a: (N, Din) f32; m_ref: (Din, Dout) bf16 composed layer matrix; b_ref: (1, Dout) f32."""
    return jnp.dot(a.astype(jnp.bfloat16), m_ref[...],
                   preferred_element_type=jnp.float32) + b_ref[...]


def _bn_relu(a, r_ref, b_ref, g_ref, bt_ref, inv_count):
    """Training-mode BatchNorm (batch stats, biased variance) + ReLU on (N, C*HW) activations.
    r_ref: (C*HW, C) 0/1 channel-reduce, b_ref: (C, C*HW) 0/1 channel-broadcast (both bf16-exact).
    TODO(synk): running_mean / running_var buffers are not tracked (forward outputs only)."""
    rowsum = jnp.sum(a, axis=0, keepdims=True)                 # (1, C*HW)
    rowsumsq = jnp.sum(a * a, axis=0, keepdims=True)
    stats = jnp.concatenate([rowsum, rowsumsq], axis=0)        # (2, C*HW)
    ch = jnp.dot(stats.astype(jnp.bfloat16), r_ref[...],
                 preferred_element_type=jnp.float32) * inv_count   # (2, C): [mean; E[x^2]]
    mean = ch[0:1, :]
    var = ch[1:2, :] - mean * mean
    scale = g_ref[...] * lax.rsqrt(var + BN_EPS)               # (1, C)
    shift = bt_ref[...] - mean * scale
    ss = jnp.concatenate([scale, shift], axis=0)               # (2, C)
    ssb = jnp.dot(ss.astype(jnp.bfloat16), b_ref[...],
                  preferred_element_type=jnp.float32)          # (2, C*HW): [scale_b; shift_b]
    return jnp.maximum(a * ssb[0:1, :] + ssb[1:2, :], 0.0)


# ----------------------------------------------------------------------------- the single fused kernel

def _vae_kernel(x_ref, eps_ref,
                e1m, e1b, e1r, e1bc, e1g, e1bt,
                e2m, e2b, e2r, e2bc, e2g, e2bt,
                mlw, mlb, dfw, dfb,
                d1m, d1b, d1r, d1bc, d1g, d1bt,
                d2m, d2b,
                recon_ref, mean_ref, logvar_ref):
    inv1 = 1.0 / (BATCH * (IMG // 2) ** 2)          # 1/128  (BN over enc conv1 output)
    inv2 = 1.0 / (BATCH * FINAL_SIZE ** 2)          # 1/32   (BN over enc conv2 output)
    inv3 = 1.0 / (BATCH * (2 * FINAL_SIZE) ** 2)    # 1/128  (BN over dec convT1 output)

    # ---- encoder -------------------------------------------------------------
    h = _affine(x_ref[...], e1m, e1b)               # (N, 8*64)
    h = _bn_relu(h, e1r, e1bc, e1g, e1bt, inv1)
    h = _affine(h, e2m, e2b)                        # (N, 16*16) == (N, FLAT)
    flat = _bn_relu(h, e2r, e2bc, e2g, e2bt, inv2)

    # ---- latent head (fc_mean|fc_logvar fused) + reparameterize + decoder fc --
    ml = _affine(flat, mlw, mlb)                    # (N, 2*LATENT)
    mean = ml[:, :LATENT]
    logvar = ml[:, LATENT:]
    z = mean + eps_ref[...] * jnp.exp(0.5 * logvar)
    d = _affine(z, dfw, dfb)                        # (N, FLAT)

    # ---- decoder -------------------------------------------------------------
    h = _affine(d, d1m, d1b)                        # (N, 8*64)
    h = _bn_relu(h, d1r, d1bc, d1g, d1bt, inv3)
    h = _affine(h, d2m, d2b)                        # (N, 1*256)
    recon_ref[...] = jax.nn.sigmoid(h)
    mean_ref[...] = mean
    logvar_ref[...] = logvar


def _fused_call(x, eps, p):
    ins = (x, eps,
           p["enc1_m"], p["enc1_b"], p["enc1_r"], p["enc1_bc"], p["enc1_g"], p["enc1_bt"],
           p["enc2_m"], p["enc2_b"], p["enc2_r"], p["enc2_bc"], p["enc2_g"], p["enc2_bt"],
           p["fc_ml_w"], p["fc_ml_b"], p["dec_fc_w"], p["dec_fc_b"],
           p["dec1_m"], p["dec1_b"], p["dec1_r"], p["dec1_bc"], p["dec1_g"], p["dec1_bt"],
           p["dec2_m"], p["dec2_b"])
    n = x.shape[0]
    outs = (jax.ShapeDtypeStruct((n, IN_CH * IMG * IMG), jnp.float32),
            jax.ShapeDtypeStruct((n, LATENT), jnp.float32),
            jax.ShapeDtypeStruct((n, LATENT), jnp.float32))
    return pl.pallas_call(
        _vae_kernel,
        grid=(1,),
        in_specs=[_full_spec(a.shape) for a in ins],
        out_specs=tuple(_full_spec(o.shape) for o in outs),
        out_shape=outs,
        compiler_params=pltpu.CompilerParams(
            dimension_semantics=("arbitrary",),
            vmem_limit_bytes=32 * 1024 * 1024),   # footprint ~2.5 MB; explicit for v7x headroom
    )(*ins)


# ----------------------------------------------------------------------------- forward

@jax.jit
def vae_forward(params, x_nchw, eps):
    """Returns (reconstruction NCHW, mean, logvar).  Only free reshapes outside the kernel."""
    n = x_nchw.shape[0]
    x = x_nchw.astype(jnp.float32).reshape(n, IN_CH * IMG * IMG)   # NCHW flatten == (c,h,w) order
    recon_flat, mean, logvar = _fused_call(x, eps.astype(jnp.float32), params)
    return recon_flat.reshape(n, IN_CH, IMG, IMG), mean, logvar


# ----------------------------------------------------------------------------- pure-JAX reference

def vae_reference(raw, x_nchw, eps):
    hp = lax.Precision.HIGHEST
    h = x_nchw
    for layer in raw["enc"]:
        h = lax.conv_general_dilated(h, layer["w"], (2, 2), ((1, 1), (1, 1)),
                                     dimension_numbers=("NCHW", "OIHW", "NCHW"), precision=hp)
        h = h + layer["b"].reshape(1, -1, 1, 1)
        m = jnp.mean(h, axis=(0, 2, 3), keepdims=True)
        v = jnp.mean((h - m) ** 2, axis=(0, 2, 3), keepdims=True)
        h = (h - m) / jnp.sqrt(v + BN_EPS)
        h = jnp.maximum(h * layer["gamma"].reshape(1, -1, 1, 1)
                        + layer["beta"].reshape(1, -1, 1, 1), 0.0)
    flat = h.reshape(h.shape[0], -1)
    mean = jnp.dot(flat, raw["fc_mean_w"].T, precision=hp) + raw["fc_mean_b"]
    logvar = jnp.dot(flat, raw["fc_logvar_w"].T, precision=hp) + raw["fc_logvar_b"]
    z = mean + eps * jnp.exp(0.5 * logvar)
    d = jnp.dot(z, raw["dec_fc_w"].T, precision=hp) + raw["dec_fc_b"]
    h = d.reshape(d.shape[0], FINAL_CH, FINAL_SIZE, FINAL_SIZE)
    n_dec = len(raw["dec"])
    for i, layer in enumerate(raw["dec"]):
        wc = jnp.flip(layer["w"], (2, 3)).transpose(1, 0, 2, 3)           # (Cout, Cin, 3, 3)
        h = lax.conv_general_dilated(h, wc, (1, 1), ((1, 2), (1, 2)), lhs_dilation=(2, 2),
                                     dimension_numbers=("NCHW", "OIHW", "NCHW"), precision=hp)
        h = h + layer["b"].reshape(1, -1, 1, 1)
        if i != n_dec - 1:
            m = jnp.mean(h, axis=(0, 2, 3), keepdims=True)
            v = jnp.mean((h - m) ** 2, axis=(0, 2, 3), keepdims=True)
            h = (h - m) / jnp.sqrt(v + BN_EPS)
            h = jnp.maximum(h * layer["gamma"].reshape(1, -1, 1, 1)
                            + layer["beta"].reshape(1, -1, 1, 1), 0.0)
        else:
            h = jax.nn.sigmoid(h)
    return h, mean, logvar


# ----------------------------------------------------------------------------- main

if __name__ == "__main__":
    key = jax.random.PRNGKey(0)
    k_par, k_x, k_eps = jax.random.split(key, 3)

    raw = init_raw_params(k_par)
    params = pack_params(raw)

    x = jax.random.normal(k_x, (BATCH, IN_CH, IMG, IMG), dtype=jnp.float32)   # NCHW, like PyTorch
    eps = jax.random.normal(k_eps, (BATCH, LATENT), dtype=jnp.float32)

    recon, mean, logvar = vae_forward(params, x, eps)
    jax.block_until_ready((recon, mean, logvar))

    assert recon.shape == (BATCH, IN_CH, IMG, IMG), recon.shape
    assert mean.shape == (BATCH, LATENT) and logvar.shape == (BATCH, LATENT)
    assert bool(jnp.all(jnp.isfinite(recon)))
    assert bool(jnp.all((recon >= 0.0) & (recon <= 1.0)))                     # sigmoid output range

    # Correctness check vs a pure-JAX (lax.conv, HIGHEST precision) reference of the same module.
    # Kernel uses bf16 MXU operands (same class as default-precision f32 TPU matmuls), hence the
    # ~1e-2 absolute tolerance.
    r_ref, m_ref, lv_ref = jax.jit(vae_reference)(raw, x, eps)
    np.testing.assert_allclose(np.asarray(mean), np.asarray(m_ref), rtol=2e-2, atol=1e-2)
    np.testing.assert_allclose(np.asarray(logvar), np.asarray(lv_ref), rtol=2e-2, atol=1e-2)
    np.testing.assert_allclose(np.asarray(recon), np.asarray(r_ref), rtol=2e-2, atol=1e-2)

    print("KERNEL_OK")
</pallas_src>

<mosaic_0001>
module attributes {stable_mosaic.version = 11 : i64} {
  func.func @_vae_kernel(%arg0: i32, %arg1: memref<2x256xf32, #tpu.memory_space<vmem>>, %arg2: memref<2x32xf32, #tpu.memory_space<vmem>>, %arg3: memref<256x512xbf16, #tpu.memory_space<vmem>>, %arg4: memref<1x512xf32, #tpu.memory_space<vmem>>, %arg5: memref<512x8xbf16, #tpu.memory_space<vmem>>, %arg6: memref<8x512xbf16, #tpu.memory_space<vmem>>, %arg7: memref<1x8xf32, #tpu.memory_space<vmem>>, %arg8: memref<1x8xf32, #tpu.memory_space<vmem>>, %arg9: memref<512x256xbf16, #tpu.memory_space<vmem>>, %arg10: memref<1x256xf32, #tpu.memory_space<vmem>>, %arg11: memref<256x16xbf16, #tpu.memory_space<vmem>>, %arg12: memref<16x256xbf16, #tpu.memory_space<vmem>>, %arg13: memref<1x16xf32, #tpu.memory_space<vmem>>, %arg14: memref<1x16xf32, #tpu.memory_space<vmem>>, %arg15: memref<256x64xbf16, #tpu.memory_space<vmem>>, %arg16: memref<1x64xf32, #tpu.memory_space<vmem>>, %arg17: memref<32x256xbf16, #tpu.memory_space<vmem>>, %arg18: memref<1x256xf32, #tpu.memory_space<vmem>>, %arg19: memref<256x512xbf16, #tpu.memory_space<vmem>>, %arg20: memref<1x512xf32, #tpu.memory_space<vmem>>, %arg21: memref<512x8xbf16, #tpu.memory_space<vmem>>, %arg22: memref<8x512xbf16, #tpu.memory_space<vmem>>, %arg23: memref<1x8xf32, #tpu.memory_space<vmem>>, %arg24: memref<1x8xf32, #tpu.memory_space<vmem>>, %arg25: memref<512x256xbf16, #tpu.memory_space<vmem>>, %arg26: memref<1x256xf32, #tpu.memory_space<vmem>>, %arg27: memref<2x256xf32, #tpu.memory_space<vmem>>, %arg28: memref<2x32xf32, #tpu.memory_space<vmem>>, %arg29: memref<2x32xf32, #tpu.memory_space<vmem>>) attributes {dimension_semantics = [#tpu.dimension_semantics<arbitrary>], iteration_bounds = array<i64: 1>, scalar_prefetch = 0 : i64, scratch_operands = 0 : i64, tpu.core_type = #tpu.core_type<tc>, window_params = [{pipeline_mode = #tpu.pipeline_mode<synchronous>, transform_indices = @transform_0, window_bounds = array<i64: 2, 256>}, {pipeline_mode = #tpu.pipeline_mode<synchronous>, transform_indices = @transform_1, window_bounds = array<i64: 2, 32>}, {pipeline_mode = #tpu.pipeline_mode<synchronous>, transform_indices = @transform_2, window_bounds = array<i64: 256, 512>}, {pipeline_mode = #tpu.pipeline_mode<synchronous>, transform_indices = @transform_3, window_bounds = array<i64: 1, 512>}, {pipeline_mode = #tpu.pipeline_mode<synchronous>, transform_indices = @transform_4, window_bounds = array<i64: 512, 8>}, {pipeline_mode = #tpu.pipeline_mode<synchronous>, transform_indices = @transform_5, window_bounds = array<i64: 8, 512>}, {pipeline_mode = #tpu.pipeline_mode<synchronous>, transform_indices = @transform_6, window_bounds = array<i64: 1, 8>}, {pipeline_mode = #tpu.pipeline_mode<synchronous>, transform_indices = @transform_7, window_bounds = array<i64: 1, 8>}, {pipeline_mode = #tpu.pipeline_mode<synchronous>, transform_indices = @transform_8, window_bounds = array<i64: 512, 256>}, {pipeline_mode = #tpu.pipeline_mode<synchronous>, transform_indices = @transform_9, window_bounds = array<i64: 1, 256>}, {pipeline_mode = #tpu.pipeline_mode<synchronous>, transform_indices = @transform_10, window_bounds = array<i64: 256, 16>}, {pipeline_mode = #tpu.pipeline_mode<synchronous>, transform_indices = @transform_11, window_bounds = array<i64: 16, 256>}, {pipeline_mode = #tpu.pipeline_mode<synchronous>, transform_indices = @transform_12, window_bounds = array<i64: 1, 16>}, {pipeline_mode = #tpu.pipeline_mode<synchronous>, transform_indices = @transform_13, window_bounds = array<i64: 1, 16>}, {pipeline_mode = #tpu.pipeline_mode<synchronous>, transform_indices = @transform_14, window_bounds = array<i64: 256, 64>}, {pipeline_mode = #tpu.pipeline_mode<synchronous>, transform_indices = @transform_15, window_bounds = array<i64: 1, 64>}, {pipeline_mode = #tpu.pipeline_mode<synchronous>, transform_indices = @transform_16, window_bounds = array<i64: 32, 256>}, {pipeline_mode = #tpu.pipeline_mode<synchronous>, transform_indices = @transform_17, window_bounds = array<i64: 1, 256>}, {pipeline_mode = #tpu.pipeline_mode<synchronous>, transform_indices = @transform_18, window_bounds = array<i64: 256, 512>}, {pipeline_mode = #tpu.pipeline_mode<synchronous>, transform_indices = @transform_19, window_bounds = array<i64: 1, 512>}, {pipeline_mode = #tpu.pipeline_mode<synchronous>, transform_indices = @transform_20, window_bounds = array<i64: 512, 8>}, {pipeline_mode = #tpu.pipeline_mode<synchronous>, transform_indices = @transform_21, window_bounds = array<i64: 8, 512>}, {pipeline_mode = #tpu.pipeline_mode<synchronous>, transform_indices = @transform_22, window_bounds = array<i64: 1, 8>}, {pipeline_mode = #tpu.pipeline_mode<synchronous>, transform_indices = @transform_23, window_bounds = array<i64: 1, 8>}, {pipeline_mode = #tpu.pipeline_mode<synchronous>, transform_indices = @transform_24, window_bounds = array<i64: 512, 256>}, {pipeline_mode = #tpu.pipeline_mode<synchronous>, transform_indices = @transform_25, window_bounds = array<i64: 1, 256>}, {pipeline_mode = #tpu.pipeline_mode<synchronous>, transform_indices = @transform_26, window_bounds = array<i64: 2, 256>}, {pipeline_mode = #tpu.pipeline_mode<synchronous>, transform_indices = @transform_27, window_bounds = array<i64: 2, 32>}, {pipeline_mode = #tpu.pipeline_mode<synchronous>, transform_indices = @transform_28, window_bounds = array<i64: 2, 32>}]} {
    %c0 = arith.constant 0 : index
    %c0_0 = arith.constant 0 : index
    %0 = vector.load %arg1[%c0, %c0_0] : memref<2x256xf32, #tpu.memory_space<vmem>>, vector<2x256xf32>
    %1 = arith.truncf %0 : vector<2x256xf32> to vector<2x256xbf16>
    %c0_1 = arith.constant 0 : index
    %c0_2 = arith.constant 0 : index
    %2 = vector.load %arg3[%c0_1, %c0_2] : memref<256x512xbf16, #tpu.memory_space<vmem>>, vector<256x512xbf16>
    %cst = arith.constant dense<0.000000e+00> : vector<2x512xf32>
    %3 = tpu.matmul %1, %2, %cst {dimension_numbers = #tpu.dot_dimension_numbers<[1], [0], [0], [1], [0, 0, 1, 1], [], []>} : vector<2x256xbf16>, vector<256x512xbf16>, vector<2x512xf32> -> vector<2x512xf32>
    %c0_3 = arith.constant 0 : index
    %c0_4 = arith.constant 0 : index
    %4 = vector.load %arg4[%c0_3, %c0_4] : memref<1x512xf32, #tpu.memory_space<vmem>>, vector<1x512xf32>
    %5 = vector.broadcast %4 : vector<1x512xf32> to vector<2x512xf32>
    %6 = arith.addf %3, %5 : vector<2x512xf32>
    %cst_5 = arith.constant dense<0.000000e+00> : vector<512xf32>
    %7 = vector.multi_reduction <add>, %6, %cst_5 [0] : vector<2x512xf32> to vector<512xf32>
    %8 = vector.shape_cast %7 : vector<512xf32> to vector<1x512xf32>
    %9 = arith.mulf %6, %6 : vector<2x512xf32>
    %cst_6 = arith.constant dense<0.000000e+00> : vector<512xf32>
    %10 = vector.multi_reduction <add>, %9, %cst_6 [0] : vector<2x512xf32> to vector<512xf32>
    %11 = vector.shape_cast %10 : vector<512xf32> to vector<1x512xf32>
    %12 = tpu.concatenate %8, %11 in 0 : vector<1x512xf32>, vector<1x512xf32> -> vector<2x512xf32>
    %13 = arith.truncf %12 : vector<2x512xf32> to vector<2x512xbf16>
    %c0_7 = arith.constant 0 : index
    %c0_8 = arith.constant 0 : index
    %14 = vector.load %arg5[%c0_7, %c0_8] : memref<512x8xbf16, #tpu.memory_space<vmem>>, vector<512x8xbf16>
    %cst_9 = arith.constant dense<0.000000e+00> : vector<2x8xf32>
    %15 = tpu.matmul %13, %14, %cst_9 {dimension_numbers = #tpu.dot_dimension_numbers<[1], [0], [0], [1], [0, 0, 1, 1], [], []>} : vector<2x512xbf16>, vector<512x8xbf16>, vector<2x8xf32> -> vector<2x8xf32>
    %cst_10 = arith.constant 7.812500e-03 : f32
    %16 = vector.broadcast %cst_10 : f32 to vector<2x8xf32>
    %17 = arith.mulf %15, %16 : vector<2x8xf32>
    %18 = vector.extract_strided_slice %17 {offsets = [0, 0], sizes = [1, 8], strides = [1, 1]} : vector<2x8xf32> to vector<1x8xf32>
    %19 = vector.extract_strided_slice %17 {offsets = [1, 0], sizes = [1, 8], strides = [1, 1]} : vector<2x8xf32> to vector<1x8xf32>
    %20 = arith.mulf %18, %18 : vector<1x8xf32>
    %21 = arith.subf %19, %20 : vector<1x8xf32>
    %c0_11 = arith.constant 0 : index
    %c0_12 = arith.constant 0 : index
    %22 = vector.load %arg7[%c0_11, %c0_12] : memref<1x8xf32, #tpu.memory_space<vmem>>, vector<1x8xf32>
    %cst_13 = arith.constant 9.99999974E-6 : f32
    %23 = vector.broadcast %cst_13 : f32 to vector<1x8xf32>
    %24 = arith.addf %21, %23 : vector<1x8xf32>
    %25 = math.rsqrt %24 : vector<1x8xf32>
    %26 = arith.mulf %22, %25 : vector<1x8xf32>
    %c0_14 = arith.constant 0 : index
    %c0_15 = arith.constant 0 : index
    %27 = vector.load %arg8[%c0_14, %c0_15] : memref<1x8xf32, #tpu.memory_space<vmem>>, vector<1x8xf32>
    %28 = arith.mulf %18, %26 : vector<1x8xf32>
    %29 = arith.subf %27, %28 : vector<1x8xf32>
    %30 = tpu.concatenate %26, %29 in 0 : vector<1x8xf32>, vector<1x8xf32> -> vector<2x8xf32>
    %31 = arith.truncf %30 : vector<2x8xf32> to vector<2x8xbf16>
    %c0_16 = arith.constant 0 : index
    %c0_17 = arith.constant 0 : index
    %32 = vector.load %arg6[%c0_16, %c0_17] : memref<8x512xbf16, #tpu.memory_space<vmem>>, vector<8x512xbf16>
    %cst_18 = arith.constant dense<0.000000e+00> : vector<2x512xf32>
    %33 = tpu.matmul %31, %32, %cst_18 {dimension_numbers = #tpu.dot_dimension_numbers<[1], [0], [0], [1], [0, 0, 1, 1], [], []>} : vector<2x8xbf16>, vector<8x512xbf16>, vector<2x512xf32> -> vector<2x512xf32>
    %34 = vector.extract_strided_slice %33 {offsets = [0, 0], sizes = [1, 512], strides = [1, 1]} : vector<2x512xf32> to vector<1x512xf32>
    %35 = vector.broadcast %34 : vector<1x512xf32> to vector<2x512xf32>
    %36 = arith.mulf %6, %35 : vector<2x512xf32>
    %37 = vector.extract_strided_slice %33 {offsets = [1, 0], sizes = [1, 512], strides = [1, 1]} : vector<2x512xf32> to vector<1x512xf32>
    %38 = vector.broadcast %37 : vector<1x512xf32> to vector<2x512xf32>
    %39 = arith.addf %36, %38 : vector<2x512xf32>
    %cst_19 = arith.constant 0.000000e+00 : f32
    %40 = vector.broadcast %cst_19 : f32 to vector<2x512xf32>
    %41 = arith.maximumf %39, %40 : vector<2x512xf32>
    %42 = arith.truncf %41 : vector<2x512xf32> to vector<2x512xbf16>
    %c0_20 = arith.constant 0 : index
    %c0_21 = arith.constant 0 : index
    %43 = vector.load %arg9[%c0_20, %c0_21] : memref<512x256xbf16, #tpu.memory_space<vmem>>, vector<512x256xbf16>
    %cst_22 = arith.constant dense<0.000000e+00> : vector<2x256xf32>
    %44 = tpu.matmul %42, %43, %cst_22 {dimension_numbers = #tpu.dot_dimension_numbers<[1], [0], [0], [1], [0, 0, 1, 1], [], []>} : vector<2x512xbf16>, vector<512x256xbf16>, vector<2x256xf32> -> vector<2x256xf32>
    %c0_23 = arith.constant 0 : index
    %c0_24 = arith.constant 0 : index
    %45 = vector.load %arg10[%c0_23, %c0_24] : memref<1x256xf32, #tpu.memory_space<vmem>>, vector<1x256xf32>
    %46 = vector.broadcast %45 : vector<1x256xf32> to vector<2x256xf32>
    %47 = arith.addf %44, %46 : vector<2x256xf32>
    %cst_25 = arith.constant dense<0.000000e+00> : vector<256xf32>
    %48 = vector.multi_reduction <add>, %47, %cst_25 [0] : vector<2x256xf32> to vector<256xf32>
    %49 = vector.shape_cast %48 : vector<256xf32> to vector<1x256xf32>
    %50 = arith.mulf %47, %47 : vector<2x256xf32>
    %cst_26 = arith.constant dense<0.000000e+00> : vector<256xf32>
    %51 = vector.multi_reduction <add>, %50, %cst_26 [0] : vector<2x256xf32> to vector<256xf32>
    %52 = vector.shape_cast %51 : vector<256xf32> to vector<1x256xf32>
    %53 = tpu.concatenate %49, %52 in 0 : vector<1x256xf32>, vector<1x256xf32> -> vector<2x256xf32>
    %54 = arith.truncf %53 : vector<2x256xf32> to vector<2x256xbf16>
    %c0_27 = arith.constant 0 : index
    %c0_28 = arith.constant 0 : index
    %55 = vector.load %arg11[%c0_27, %c0_28] : memref<256x16xbf16, #tpu.memory_space<vmem>>, vector<256x16xbf16>
    %cst_29 = arith.constant dense<0.000000e+00> : vector<2x16xf32>
    %56 = tpu.matmul %54, %55, %cst_29 {dimension_numbers = #tpu.dot_dimension_numbers<[1], [0], [0], [1], [0, 0, 1, 1], [], []>} : vector<2x256xbf16>, vector<256x16xbf16>, vector<2x16xf32> -> vector<2x16xf32>
    %cst_30 = arith.constant 3.125000e-02 : f32
    %57 = vector.broadcast %cst_30 : f32 to vector<2x16xf32>
    %58 = arith.mulf %56, %57 : vector<2x16xf32>
    %59 = vector.extract_strided_slice %58 {offsets = [0, 0], sizes = [1, 16], strides = [1, 1]} : vector<2x16xf32> to vector<1x16xf32>
    %60 = vector.extract_strided_slice %58 {offsets = [1, 0], sizes = [1, 16], strides = [1, 1]} : vector<2x16xf32> to vector<1x16xf32>
    %61 = arith.mulf %59, %59 : vector<1x16xf32>
    %62 = arith.subf %60, %61 : vector<1x16xf32>
    %c0_31 = arith.constant 0 : index
    %c0_32 = arith.constant 0 : index
    %63 = vector.load %arg13[%c0_31, %c0_32] : memref<1x16xf32, #tpu.memory_space<vmem>>, vector<1x16xf32>
    %cst_33 = arith.constant 9.99999974E-6 : f32
    %64 = vector.broadcast %cst_33 : f32 to vector<1x16xf32>
    %65 = arith.addf %62, %64 : vector<1x16xf32>
    %66 = math.rsqrt %65 : vector<1x16xf32>
    %67 = arith.mulf %63, %66 : vector<1x16xf32>
    %c0_34 = arith.constant 0 : index
    %c0_35 = arith.constant 0 : index
    %68 = vector.load %arg14[%c0_34, %c0_35] : memref<1x16xf32, #tpu.memory_space<vmem>>, vector<1x16xf32>
    %69 = arith.mulf %59, %67 : vector<1x16xf32>
    %70 = arith.subf %68, %69 : vector<1x16xf32>
    %71 = tpu.concatenate %67, %70 in 0 : vector<1x16xf32>, vector<1x16xf32> -> vector<2x16xf32>
    %72 = arith.truncf %71 : vector<2x16xf32> to vector<2x16xbf16>
    %c0_36 = arith.constant 0 : index
    %c0_37 = arith.constant 0 : index
    %73 = vector.load %arg12[%c0_36, %c0_37] : memref<16x256xbf16, #tpu.memory_space<vmem>>, vector<16x256xbf16>
    %cst_38 = arith.constant dense<0.000000e+00> : vector<2x256xf32>
    %74 = tpu.matmul %72, %73, %cst_38 {dimension_numbers = #tpu.dot_dimension_numbers<[1], [0], [0], [1], [0, 0, 1, 1], [], []>} : vector<2x16xbf16>, vector<16x256xbf16>, vector<2x256xf32> -> vector<2x256xf32>
    %75 = vector.extract_strided_slice %74 {offsets = [0, 0], sizes = [1, 256], strides = [1, 1]} : vector<2x256xf32> to vector<1x256xf32>
    %76 = vector.broadcast %75 : vector<1x256xf32> to vector<2x256xf32>
    %77 = arith.mulf %47, %76 : vector<2x256xf32>
    %78 = vector.extract_strided_slice %74 {offsets = [1, 0], sizes = [1, 256], strides = [1, 1]} : vector<2x256xf32> to vector<1x256xf32>
    %79 = vector.broadcast %78 : vector<1x256xf32> to vector<2x256xf32>
    %80 = arith.addf %77, %79 : vector<2x256xf32>
    %cst_39 = arith.constant 0.000000e+00 : f32
    %81 = vector.broadcast %cst_39 : f32 to vector<2x256xf32>
    %82 = arith.maximumf %80, %81 : vector<2x256xf32>
    %83 = arith.truncf %82 : vector<2x256xf32> to vector<2x256xbf16>
    %c0_40 = arith.constant 0 : index
    %c0_41 = arith.constant 0 : index
    %84 = vector.load %arg15[%c0_40, %c0_41] : memref<256x64xbf16, #tpu.memory_space<vmem>>, vector<256x64xbf16>
    %cst_42 = arith.constant dense<0.000000e+00> : vector<2x64xf32>
    %85 = tpu.matmul %83, %84, %cst_42 {dimension_numbers = #tpu.dot_dimension_numbers<[1], [0], [0], [1], [0, 0, 1, 1], [], []>} : vector<2x256xbf16>, vector<256x64xbf16>, vector<2x64xf32> -> vector<2x64xf32>
    %c0_43 = arith.constant 0 : index
    %c0_44 = arith.constant 0 : index
    %86 = vector.load %arg16[%c0_43, %c0_44] : memref<1x64xf32, #tpu.memory_space<vmem>>, vector<1x64xf32>
    %87 = vector.broadcast %86 : vector<1x64xf32> to vector<2x64xf32>
    %88 = arith.addf %85, %87 : vector<2x64xf32>
    %89 = vector.extract_strided_slice %88 {offsets = [0, 0], sizes = [2, 32], strides = [1, 1]} : vector<2x64xf32> to vector<2x32xf32>
    %90 = vector.extract_strided_slice %88 {offsets = [0, 32], sizes = [2, 32], strides = [1, 1]} : vector<2x64xf32> to vector<2x32xf32>
    %c0_45 = arith.constant 0 : index
    %c0_46 = arith.constant 0 : index
    %91 = vector.load %arg2[%c0_45, %c0_46] : memref<2x32xf32, #tpu.memory_space<vmem>>, vector<2x32xf32>
    %cst_47 = arith.constant 5.000000e-01 : f32
    %92 = vector.broadcast %cst_47 : f32 to vector<2x32xf32>
    %93 = arith.mulf %92, %90 : vector<2x32xf32>
    %94 = math.exp %93 : vector<2x32xf32>
    %95 = arith.mulf %91, %94 : vector<2x32xf32>
    %96 = arith.addf %89, %95 : vector<2x32xf32>
    %97 = arith.truncf %96 : vector<2x32xf32> to vector<2x32xbf16>
    %c0_48 = arith.constant 0 : index
    %c0_49 = arith.constant 0 : index
    %98 = vector.load %arg17[%c0_48, %c0_49] : memref<32x256xbf16, #tpu.memory_space<vmem>>, vector<32x256xbf16>
    %cst_50 = arith.constant dense<0.000000e+00> : vector<2x256xf32>
    %99 = tpu.matmul %97, %98, %cst_50 {dimension_numbers = #tpu.dot_dimension_numbers<[1], [0], [0], [1], [0, 0, 1, 1], [], []>} : vector<2x32xbf16>, vector<32x256xbf16>, vector<2x256xf32> -> vector<2x256xf32>
    %c0_51 = arith.constant 0 : index
    %c0_52 = arith.constant 0 : index
    %100 = vector.load %arg18[%c0_51, %c0_52] : memref<1x256xf32, #tpu.memory_space<vmem>>, vector<1x256xf32>
    %101 = vector.broadcast %100 : vector<1x256xf32> to vector<2x256xf32>
    %102 = arith.addf %99, %101 : vector<2x256xf32>
    %103 = arith.truncf %102 : vector<2x256xf32> to vector<2x256xbf16>
    %c0_53 = arith.constant 0 : index
    %c0_54 = arith.constant 0 : index
    %104 = vector.load %arg19[%c0_53, %c0_54] : memref<256x512xbf16, #tpu.memory_space<vmem>>, vector<256x512xbf16>
    %cst_55 = arith.constant dense<0.000000e+00> : vector<2x512xf32>
    %105 = tpu.matmul %103, %104, %cst_55 {dimension_numbers = #tpu.dot_dimension_numbers<[1], [0], [0], [1], [0, 0, 1, 1], [], []>} : vector<2x256xbf16>, vector<256x512xbf16>, vector<2x512xf32> -> vector<2x512xf32>
    %c0_56 = arith.constant 0 : index
    %c0_57 = arith.constant 0 : index
    %106 = vector.load %arg20[%c0_56, %c0_57] : memref<1x512xf32, #tpu.memory_space<vmem>>, vector<1x512xf32>
    %107 = vector.broadcast %106 : vector<1x512xf32> to vector<2x512xf32>
    %108 = arith.addf %105, %107 : vector<2x512xf32>
    %cst_58 = arith.constant dense<0.000000e+00> : vector<512xf32>
    %109 = vector.multi_reduction <add>, %108, %cst_58 [0] : vector<2x512xf32> to vector<512xf32>
    %110 = vector.shape_cast %109 : vector<512xf32> to vector<1x512xf32>
    %111 = arith.mulf %108, %108 : vector<2x512xf32>
    %cst_59 = arith.constant dense<0.000000e+00> : vector<512xf32>
    %112 = vector.multi_reduction <add>, %111, %cst_59 [0] : vector<2x512xf32> to vector<512xf32>
    %113 = vector.shape_cast %112 : vector<512xf32> to vector<1x512xf32>
    %114 = tpu.concatenate %110, %113 in 0 : vector<1x512xf32>, vector<1x512xf32> -> vector<2x512xf32>
    %115 = arith.truncf %114 : vector<2x512xf32> to vector<2x512xbf16>
    %c0_60 = arith.constant 0 : index
    %c0_61 = arith.constant 0 : index
    %116 = vector.load %arg21[%c0_60, %c0_61] : memref<512x8xbf16, #tpu.memory_space<vmem>>, vector<512x8xbf16>
    %cst_62 = arith.constant dense<0.000000e+00> : vector<2x8xf32>
    %117 = tpu.matmul %115, %116, %cst_62 {dimension_numbers = #tpu.dot_dimension_numbers<[1], [0], [0], [1], [0, 0, 1, 1], [], []>} : vector<2x512xbf16>, vector<512x8xbf16>, vector<2x8xf32> -> vector<2x8xf32>
    %cst_63 = arith.constant 7.812500e-03 : f32
    %118 = vector.broadcast %cst_63 : f32 to vector<2x8xf32>
    %119 = arith.mulf %117, %118 : vector<2x8xf32>
    %120 = vector.extract_strided_slice %119 {offsets = [0, 0], sizes = [1, 8], strides = [1, 1]} : vector<2x8xf32> to vector<1x8xf32>
    %121 = vector.extract_strided_slice %119 {offsets = [1, 0], sizes = [1, 8], strides = [1, 1]} : vector<2x8xf32> to vector<1x8xf32>
    %122 = arith.mulf %120, %120 : vector<1x8xf32>
    %123 = arith.subf %121, %122 : vector<1x8xf32>
    %c0_64 = arith.constant 0 : index
    %c0_65 = arith.constant 0 : index
    %124 = vector.load %arg23[%c0_64, %c0_65] : memref<1x8xf32, #tpu.memory_space<vmem>>, vector<1x8xf32>
    %cst_66 = arith.constant 9.99999974E-6 : f32
    %125 = vector.broadcast %cst_66 : f32 to vector<1x8xf32>
    %126 = arith.addf %123, %125 : vector<1x8xf32>
    %127 = math.rsqrt %126 : vector<1x8xf32>
    %128 = arith.mulf %124, %127 : vector<1x8xf32>
    %c0_67 = arith.constant 0 : index
    %c0_68 = arith.constant 0 : index
    %129 = vector.load %arg24[%c0_67, %c0_68] : memref<1x8xf32, #tpu.memory_space<vmem>>, vector<1x8xf32>
    %130 = arith.mulf %120, %128 : vector<1x8xf32>
    %131 = arith.subf %129, %130 : vector<1x8xf32>
    %132 = tpu.concatenate %128, %131 in 0 : vector<1x8xf32>, vector<1x8xf32> -> vector<2x8xf32>
    %133 = arith.truncf %132 : vector<2x8xf32> to vector<2x8xbf16>
    %c0_69 = arith.constant 0 : index
    %c0_70 = arith.constant 0 : index
    %134 = vector.load %arg22[%c0_69, %c0_70] : memref<8x512xbf16, #tpu.memory_space<vmem>>, vector<8x512xbf16>
    %cst_71 = arith.constant dense<0.000000e+00> : vector<2x512xf32>
    %135 = tpu.matmul %133, %134, %cst_71 {dimension_numbers = #tpu.dot_dimension_numbers<[1], [0], [0], [1], [0, 0, 1, 1], [], []>} : vector<2x8xbf16>, vector<8x512xbf16>, vector<2x512xf32> -> vector<2x512xf32>
    %136 = vector.extract_strided_slice %135 {offsets = [0, 0], sizes = [1, 512], strides = [1, 1]} : vector<2x512xf32> to vector<1x512xf32>
    %137 = vector.broadcast %136 : vector<1x512xf32> to vector<2x512xf32>
    %138 = arith.mulf %108, %137 : vector<2x512xf32>
    %139 = vector.extract_strided_slice %135 {offsets = [1, 0], sizes = [1, 512], strides = [1, 1]} : vector<2x512xf32> to vector<1x512xf32>
    %140 = vector.broadcast %139 : vector<1x512xf32> to vector<2x512xf32>
    %141 = arith.addf %138, %140 : vector<2x512xf32>
    %cst_72 = arith.constant 0.000000e+00 : f32
    %142 = vector.broadcast %cst_72 : f32 to vector<2x512xf32>
    %143 = arith.maximumf %141, %142 : vector<2x512xf32>
    %144 = arith.truncf %143 : vector<2x512xf32> to vector<2x512xbf16>
    %c0_73 = arith.constant 0 : index
    %c0_74 = arith.constant 0 : index
    %145 = vector.load %arg25[%c0_73, %c0_74] : memref<512x256xbf16, #tpu.memory_space<vmem>>, vector<512x256xbf16>
    %cst_75 = arith.constant dense<0.000000e+00> : vector<2x256xf32>
    %146 = tpu.matmul %144, %145, %cst_75 {dimension_numbers = #tpu.dot_dimension_numbers<[1], [0], [0], [1], [0, 0, 1, 1], [], []>} : vector<2x512xbf16>, vector<512x256xbf16>, vector<2x256xf32> -> vector<2x256xf32>
    %c0_76 = arith.constant 0 : index
    %c0_77 = arith.constant 0 : index
    %147 = vector.load %arg26[%c0_76, %c0_77] : memref<1x256xf32, #tpu.memory_space<vmem>>, vector<1x256xf32>
    %148 = vector.broadcast %147 : vector<1x256xf32> to vector<2x256xf32>
    %149 = arith.addf %146, %148 : vector<2x256xf32>
    %150 = arith.negf %149 : vector<2x256xf32>
    %151 = math.exp %150 : vector<2x256xf32>
    %cst_78 = arith.constant 1.000000e+00 : f32
    %152 = vector.broadcast %cst_78 : f32 to vector<2x256xf32>
    %153 = arith.addf %152, %151 : vector<2x256xf32>
    %154 = arith.divf %152, %153 : vector<2x256xf32>
    %c0_79 = arith.constant 0 : index
    %c0_80 = arith.constant 0 : index
    %155 = vector.load %arg27[%c0_79, %c0_80] : memref<2x256xf32, #tpu.memory_space<vmem>>, vector<2x256xf32>
    tpu.vector_store %arg27[%c0_79, %c0_80], %154 {strides = array<i32>} : memref<2x256xf32, #tpu.memory_space<vmem>>, vector<2x256xf32>,
    %c0_81 = arith.constant 0 : index
    %c0_82 = arith.constant 0 : index
    %156 = vector.load %arg28[%c0_81, %c0_82] : memref<2x32xf32, #tpu.memory_space<vmem>>, vector<2x32xf32>
    tpu.vector_store %arg28[%c0_81, %c0_82], %89 {strides = array<i32>} : memref<2x32xf32, #tpu.memory_space<vmem>>, vector<2x32xf32>,
    %c0_83 = arith.constant 0 : index
    %c0_84 = arith.constant 0 : index
    %157 = vector.load %arg29[%c0_83, %c0_84] : memref<2x32xf32, #tpu.memory_space<vmem>>, vector<2x32xf32>
    tpu.vector_store %arg29[%c0_83, %c0_84], %90 {strides = array<i32>} : memref<2x32xf32, #tpu.memory_space<vmem>>, vector<2x32xf32>,
    return
  }
  func.func @transform_0(%arg0: i32) -> (i32, i32) {
    %c0_i32 = arith.constant 0 : i32
    %c0_i32_0 = arith.constant 0 : i32
    %c0_i32_1 = arith.constant 0 : i32
    return %c0_i32, %c0_i32_0 : i32, i32
  }
  func.func @transform_1(%arg0: i32) -> (i32, i32) {
    %c0_i32 = arith.constant 0 : i32
    %c0_i32_0 = arith.constant 0 : i32
    %c0_i32_1 = arith.constant 0 : i32
    return %c0_i32, %c0_i32_0 : i32, i32
  }
  func.func @transform_2(%arg0: i32) -> (i32, i32) {
    %c0_i32 = arith.constant 0 : i32
    %c0_i32_0 = arith.constant 0 : i32
    %c0_i32_1 = arith.constant 0 : i32
    return %c0_i32, %c0_i32_0 : i32, i32
  }
  func.func @transform_3(%arg0: i32) -> (i32, i32) {
    %c0_i32 = arith.constant 0 : i32
    %c0_i32_0 = arith.constant 0 : i32
    %c0_i32_1 = arith.constant 0 : i32
    return %c0_i32, %c0_i32_0 : i32, i32
  }
  func.func @transform_4(%arg0: i32) -> (i32, i32) {
    %c0_i32 = arith.constant 0 : i32
    %c0_i32_0 = arith.constant 0 : i32
    %c0_i32_1 = arith.constant 0 : i32
    return %c0_i32, %c0_i32_0 : i32, i32
  }
  func.func @transform_5(%arg0: i32) -> (i32, i32) {
    %c0_i32 = arith.constant 0 : i32
    %c0_i32_0 = arith.constant 0 : i32
    %c0_i32_1 = arith.constant 0 : i32
    return %c0_i32, %c0_i32_0 : i32, i32
  }
  func.func @transform_6(%arg0: i32) -> (i32, i32) {
    %c0_i32 = arith.constant 0 : i32
    %c0_i32_0 = arith.constant 0 : i32
    %c0_i32_1 = arith.constant 0 : i32
    return %c0_i32, %c0_i32_0 : i32, i32
  }
  func.func @transform_7(%arg0: i32) -> (i32, i32) {
    %c0_i32 = arith.constant 0 : i32
    %c0_i32_0 = arith.constant 0 : i32
    %c0_i32_1 = arith.constant 0 : i32
    return %c0_i32, %c0_i32_0 : i32, i32
  }
  func.func @transform_8(%arg0: i32) -> (i32, i32) {
    %c0_i32 = arith.constant 0 : i32
    %c0_i32_0 = arith.constant 0 : i32
    %c0_i32_1 = arith.constant 0 : i32
    return %c0_i32, %c0_i32_0 : i32, i32
  }
  func.func @transform_9(%arg0: i32) -> (i32, i32) {
    %c0_i32 = arith.constant 0 : i32
    %c0_i32_0 = arith.constant 0 : i32
    %c0_i32_1 = arith.constant 0 : i32
    return %c0_i32, %c0_i32_0 : i32, i32
  }
  func.func @transform_10(%arg0: i32) -> (i32, i32) {
    %c0_i32 = arith.constant 0 : i32
    %c0_i32_0 = arith.constant 0 : i32
    %c0_i32_1 = arith.constant 0 : i32
    return %c0_i32, %c0_i32_0 : i32, i32
  }
  func.func @transform_11(%arg0: i32) -> (i32, i32) {
    %c0_i32 = arith.constant 0 : i32
    %c0_i32_0 = arith.constant 0 : i32
    %c0_i32_1 = arith.constant 0 : i32
    return %c0_i32, %c0_i32_0 : i32, i32
  }
  func.func @transform_12(%arg0: i32) -> (i32, i32) {
    %c0_i32 = arith.constant 0 : i32
    %c0_i32_0 = arith.constant 0 : i32
    %c0_i32_1 = arith.constant 0 : i32
    return %c0_i32, %c0_i32_0 : i32, i32
  }
  func.func @transform_13(%arg0: i32) -> (i32, i32) {
    %c0_i32 = arith.constant 0 : i32
    %c0_i32_0 = arith.constant 0 : i32
    %c0_i32_1 = arith.constant 0 : i32
    return %c0_i32, %c0_i32_0 : i32, i32
  }
  func.func @transform_14(%arg0: i32) -> (i32, i32) {
    %c0_i32 = arith.constant 0 : i32
    %c0_i32_0 = arith.constant 0 : i32
    %c0_i32_1 = arith.constant 0 : i32
    return %c0_i32, %c0_i32_0 : i32, i32
  }
  func.func @transform_15(%arg0: i32) -> (i32, i32) {
    %c0_i32 = arith.constant 0 : i32
    %c0_i32_0 = arith.constant 0 : i32
    %c0_i32_1 = arith.constant 0 : i32
    return %c0_i32, %c0_i32_0 : i32, i32
  }
  func.func @transform_16(%arg0: i32) -> (i32, i32) {
    %c0_i32 = arith.constant 0 : i32
    %c0_i32_0 = arith.constant 0 : i32
    %c0_i32_1 = arith.constant 0 : i32
    return %c0_i32, %c0_i32_0 : i32, i32
  }
  func.func @transform_17(%arg0: i32) -> (i32, i32) {
    %c0_i32 = arith.constant 0 : i32
    %c0_i32_0 = arith.constant 0 : i32
    %c0_i32_1 = arith.constant 0 : i32
    return %c0_i32, %c0_i32_0 : i32, i32
  }
  func.func @transform_18(%arg0: i32) -> (i32, i32) {
    %c0_i32 = arith.constant 0 : i32
    %c0_i32_0 = arith.constant 0 : i32
    %c0_i32_1 = arith.constant 0 : i32
    return %c0_i32, %c0_i32_0 : i32, i32
  }
  func.func @transform_19(%arg0: i32) -> (i32, i32) {
    %c0_i32 = arith.constant 0 : i32
    %c0_i32_0 = arith.constant 0 : i32
    %c0_i32_1 = arith.constant 0 : i32
    return %c0_i32, %c0_i32_0 : i32, i32
  }
  func.func @transform_20(%arg0: i32) -> (i32, i32) {
    %c0_i32 = arith.constant 0 : i32
    %c0_i32_0 = arith.constant 0 : i32
    %c0_i32_1 = arith.constant 0 : i32
    return %c0_i32, %c0_i32_0 : i32, i32
  }
  func.func @transform_21(%arg0: i32) -> (i32, i32) {
    %c0_i32 = arith.constant 0 : i32
    %c0_i32_0 = arith.constant 0 : i32
    %c0_i32_1 = arith.constant 0 : i32
    return %c0_i32, %c0_i32_0 : i32, i32
  }
  func.func @transform_22(%arg0: i32) -> (i32, i32) {
    %c0_i32 = arith.constant 0 : i32
    %c0_i32_0 = arith.constant 0 : i32
    %c0_i32_1 = arith.constant 0 : i32
    return %c0_i32, %c0_i32_0 : i32, i32
  }
  func.func @transform_23(%arg0: i32) -> (i32, i32) {
    %c0_i32 = arith.constant 0 : i32
    %c0_i32_0 = arith.constant 0 : i32
    %c0_i32_1 = arith.constant 0 : i32
    return %c0_i32, %c0_i32_0 : i32, i32
  }
  func.func @transform_24(%arg0: i32) -> (i32, i32) {
    %c0_i32 = arith.constant 0 : i32
    %c0_i32_0 = arith.constant 0 : i32
    %c0_i32_1 = arith.constant 0 : i32
    return %c0_i32, %c0_i32_0 : i32, i32
  }
  func.func @transform_25(%arg0: i32) -> (i32, i32) {
    %c0_i32 = arith.constant 0 : i32
    %c0_i32_0 = arith.constant 0 : i32
    %c0_i32_1 = arith.constant 0 : i32
    return %c0_i32, %c0_i32_0 : i32, i32
  }
  func.func @transform_26(%arg0: i32) -> (i32, i32) {
    %c0_i32 = arith.constant 0 : i32
    %c0_i32_0 = arith.constant 0 : i32
    %c0_i32_1 = arith.constant 0 : i32
    return %c0_i32, %c0_i32_0 : i32, i32
  }
  func.func @transform_27(%arg0: i32) -> (i32, i32) {
    %c0_i32 = arith.constant 0 : i32
    %c0_i32_0 = arith.constant 0 : i32
    %c0_i32_1 = arith.constant 0 : i32
    return %c0_i32, %c0_i32_0 : i32, i32
  }
  func.func @transform_28(%arg0: i32) -> (i32, i32) {
    %c0_i32 = arith.constant 0 : i32
    %c0_i32_0 = arith.constant 0 : i32
    %c0_i32_1 = arith.constant 0 : i32
    return %c0_i32, %c0_i32_0 : i32, i32
  }
}

</mosaic_0001>

<bundles_post_ra>
// kernel: vae_forward.1
= control target key start
LH: loop header
LB: loop body
LE: loop exit
PB: predicated region body
PF: predicated region fallthrough
CT: control target
= control target key end

     0   :  { %s6064_s0 = inlined_call_operand.vmem [shape: f32[2,256], index: 0, kind: input, shape index: {}]   ;;  %s6065_s1 = inlined_call_operand.vmem [shape: f32[2,32], index: 1, kind: input, shape index: {}]   ;;  %s6066_s2 = inlined_call_operand.vmem [shape: bf16[256,512], index: 2, kind: input, shape index: {}]   ;;  %s6067_s3 = inlined_call_operand.vmem [shape: f32[1,512], index: 3, kind: input, shape index: {}]   ;;  %s6068_s4 = inlined_call_operand.vmem [shape: bf16[512,8], index: 4, kind: input, shape index: {}]   ;;  %s6069_s5 = inlined_call_operand.vmem [shape: bf16[8,512], index: 5, kind: input, shape index: {}]   ;;  %s6070_s6 = inlined_call_operand.vmem [shape: f32[1,8], index: 6, kind: input, shape index: {}]   ;;  %s6071_s7 = inlined_call_operand.vmem [shape: f32[1,8], index: 7, kind: input, shape index: {}]   ;;  %s6072_s8 = inlined_call_operand.hbm [shape: bf16[512,256], index: 8, kind: input, shape index: {}]   ;;  %s6073_s9 = inlined_call_operand.vmem [shape: f32[1,256], index: 9, kind: input, shape index: {}]   ;;  %s6074_s10 = inlined_call_operand.vmem [shape: bf16[256,16], index: 10, kind: input, shape index: {}]   ;;  %s6075_s11 = inlined_call_operand.vmem [shape: bf16[16,256], index: 11, kind: input, shape index: {}]   ;;  %s6076_s12 = inlined_call_operand.vmem [shape: f32[1,16], index: 12, kind: input, shape index: {}]   ;;  %s6077_s13 = inlined_call_operand.vmem [shape: f32[1,16], index: 13, kind: input, shape index: {}]   ;;  %s6078_s14 = inlined_call_operand.vmem [shape: bf16[256,64], index: 14, kind: input, shape index: {}]   ;;  %s6079_s15 = inlined_call_operand.vmem [shape: f32[1,64], index: 15, kind: input, shape index: {}]   ;;  %s6080_s16 = inlined_call_operand.vmem [shape: bf16[32,256], index: 16, kind: input, shape index: {}]   ;;  %s6081_s17 = inlined_call_operand.vmem [shape: f32[1,256], index: 17, kind: input, shape index: {}]   ;;  %s6082_s18 = inlined_call_operand.hbm [shape: bf16[256,512], index: 18, kind: input, shape index: {}]   ;;  %s6083_s19 = inlined_call_operand.vmem [shape: f32[1,512], index: 19, kind: input, shape index: {}]   ;;  %s6084_s20 = inlined_call_operand.vmem [shape: bf16[512,8], index: 20, kind: input, shape index: {}]   ;;  %s6085_s21 = inlined_call_operand.vmem [shape: bf16[8,512], index: 21, kind: input, shape index: {}]   ;;  %s6086_s22 = inlined_call_operand.vmem [shape: f32[1,8], index: 22, kind: input, shape index: {}]   ;;  %s6087_s23 = inlined_call_operand.vmem [shape: f32[1,8], index: 23, kind: input, shape index: {}]   ;;  %s6088_s24 = inlined_call_operand.hbm [shape: bf16[512,256], index: 24, kind: input, shape index: {}]   ;;  %s6089_s25 = inlined_call_operand.vmem [shape: f32[1,256], index: 25, kind: input, shape index: {}]   ;;  %s6090_s26 = inlined_call_operand.vmem [shape: f32[2,256], index: 26, kind: output, shape index: {0}]   ;;  %s6091_s27 = inlined_call_operand.hbm [shape: f32[2,32], index: 27, kind: output, shape index: {1}]   ;;  %s6092_s28 = inlined_call_operand.hbm [shape: f32[2,32], index: 28, kind: output, shape index: {2}]  }
   0x1   :  { %6099 = sst [smem:[#allocation15_spill]] %s6064_s0 }
   0x2   :  { %6100 = sst [smem:[#allocation16_spill]] %s6065_s1 }
   0x3   :  { %6101 = sst [smem:[#allocation17_spill]] %s6066_s2 }
   0x4   :  { %6102 = sst [smem:[#allocation18_spill]] %s6067_s3 }
   0x5   :  { %6103 = sst [smem:[#allocation19_spill]] %s6068_s4 }
   0x6   :  { %6104 = sst [smem:[#allocation20_spill]] %s6069_s5 }
   0x7   :  { %6105 = sst [smem:[#allocation21_spill]] %s6070_s6 }
   0x8   :  { %6106 = sst [smem:[#allocation22_spill]] %s6071_s7 }
   0x9   :  { %6107 = sst [smem:[#allocation23_spill]] %s6072_s8 }
   0xa   :  { %6108 = sst [smem:[#allocation24_spill]] %s6073_s9 }
   0xb   :  { %6109 = sst [smem:[#allocation25_spill]] %s6074_s10 }
   0xc   :  { %6110 = sst [smem:[#allocation26_spill]] %s6075_s11 }
   0xd   :  { %6111 = sst [smem:[#allocation27_spill]] %s6076_s12 }
   0xe   :  { %6112 = sst [smem:[#allocation28_spill]] %s6090_s26 }
   0xf   :  { %34 = vsyncpa [#allocation3], 0 }
  0x10   :  { %35 = vsyncpa [#allocation6], 0 }
  0x11   :  { %36 = vsyncpa [#allocation4], 0 }
  0x12   :  { %37 = vsyncpa [#allocation10], 0  ;;  %s5101_s8 = smov [#allocation5]   ;;  %s4983_s3 = scalar_lea.hbm %s6082_s18, 8192 }
  0x13   :  { %s89_s5 = sshll.u32 %s5101_s8, 4  ;;  %p4984_p0 = scmp.ne.s32.totalorder %s6082_s18, %s4983_s3  ;;  %s90_s5 = int_to_ptr.vmem [resolvable:$true] %s89_s5 }
  0x14   :  { %p4987_p1 = scmp.lt.u32.totalorder %s4983_s3, %s6082_s18 }
  0x16   :  { %p4989_p2 = pnand %p4987_p1, %p4984_p0 }
  0x18   :  { %4992 = shalt.err (!%p4989_p2)
}
  0x19   :  { %s4993_s29 = scalar_lea.vmem %s90_s5, 8192  ;;  %p4998_p4 = scmp.lt.s32.totalorder %s90_s5, %s90_s5 }
  0x1a   :  { %p4994_p3 = scmp.ne.s32.totalorder %s90_s5, %s4993_s29  ;;  %p4999_p5 = scmp.lt.s32.totalorder %s4993_s29, %s4993_s29 }
  0x1c   :  { %p5000_p6 = por %p4999_p5, %p4998_p4 }
  0x1e   :  { %p5001_p7 = pnand %p5000_p6, %p4994_p3 }
  0x20   :  { %5004 = shalt.err (!%p5001_p7)
}
  0x21   :  { %s5102_s2 = smov 256   ;;  %s5103_s7 = smov 16  }
  0x22   :  { %95 = dma.hbm_to_vmem [thread:$0]  %s6082_s18, 8192, %s90_s5, [#allocation6], %s5102_s2, %s5102_s2, %s5103_s7  }
  0x23   :  { %s5104_s4 = smov [#allocation2]   ;;  %s6113_s3 = sld [smem:[#allocation23_spill]] }
  0x24   :  { %s59_s8 = sshll.u32 %s5104_s4, 4  ;;  %s60_s8 = int_to_ptr.vmem [resolvable:$true] %s59_s8 }
  0x29   :  { %s5005_s6 = scalar_lea.hbm %s6113_s3, 8192 }
  0x2a   :  { %p5006_p8 = scmp.ne.s32.totalorder %s6113_s3, %s5005_s6  ;;  %p5009_p9 = scmp.lt.u32.totalorder %s5005_s6, %s6113_s3 }
  0x2c   :  { %p5011_p10 = pnand %p5009_p9, %p5006_p8 }
  0x2e   :  { %5014 = shalt.err (!%p5011_p10)
}
  0x2f   :  { %s5015_s26 = scalar_lea.vmem %s60_s8, 8192  ;;  %p5020_p12 = scmp.lt.s32.totalorder %s60_s8, %s60_s8 }
  0x30   :  { %p5016_p11 = scmp.ne.s32.totalorder %s60_s8, %s5015_s26  ;;  %p5021_p13 = scmp.lt.s32.totalorder %s5015_s26, %s5015_s26 }
  0x32   :  { %p5022_p0 = por %p5021_p13, %p5020_p12 }
  0x34   :  { %p5023_p1 = pnand %p5022_p0, %p5016_p11 }
  0x36   :  { %5026 = shalt.err (!%p5023_p1)
}
  0x37   :  { %s5105_s18 = smov 128   ;;  %s5106_s5 = smov 8  }
  0x38   :  { %65 = dma.hbm_to_vmem [thread:$0]  %s6113_s3, 8192, %s60_s8, [#allocation3], %s5105_s18, %s5105_s18, %s5106_s5  }
  0x39   :  { %s5107_s12 = smov [#allocation7]   ;;  %s5027_s30 = scalar_lea.hbm %s6088_s24, 8192 }
  0x3a   :  { %s111_s1 = sshll.u32 %s5107_s12, 4  ;;  %p5028_p2 = scmp.ne.s32.totalorder %s6088_s24, %s5027_s30  ;;  %s112_s1 = int_to_ptr.vmem [resolvable:$true] %s111_s1 }
  0x3b   :  { %p5031_p3 = scmp.lt.u32.totalorder %s5027_s30, %s6088_s24 }
  0x3d   :  { %p5033_p4 = pnand %p5031_p3, %p5028_p2 }
  0x3f   :  { %5036 = shalt.err (!%p5033_p4)
}
  0x40   :  { %s5037_s11 = scalar_lea.vmem %s112_s1, 8192  ;;  %p5042_p6 = scmp.lt.s32.totalorder %s112_s1, %s112_s1 }
  0x41   :  { %p5038_p5 = scmp.ne.s32.totalorder %s112_s1, %s5037_s11  ;;  %p5043_p7 = scmp.lt.s32.totalorder %s5037_s11, %s5037_s11 }
  0x43   :  { %p5044_p8 = por %p5043_p7, %p5042_p6 }
  0x45   :  { %p5045_p9 = pnand %p5044_p8, %p5038_p5 }
  0x47   :  { %5048 = shalt.err (!%p5045_p9)
}
  0x48   :  { %117 = dma.hbm_to_vmem [thread:$0]  %s6088_s24, 8192, %s112_s1, [#allocation6], %s5105_s18, %s5105_s18, %s5106_s5  }
  0x49   :  { %5093 = dma.done.wait [#allocation3], 8192  }
  0x4a   :  { %5094 = vsyncadd [#allocation3], 4294959104 }
  0x4b   :  { %5095 = dma.done.wait [#allocation6], 16384  }
  0x4c   :  { %5096 = vsyncadd [#allocation6], 4294950912  ;;  %s6114_s7 = sld [smem:[#allocation17_spill]]  ;;  %s6115_s10 = sld [smem:[#allocation15_spill]]  ;;  %vm632_vm0 = vcmask 1041408   ;;  %vm693_vm1 = vcmask 1040384  }
  0x4d   :  { %s6116_s9 = sld [smem:[#allocation19_spill]]  ;;  %s6117_s3 = sld [smem:[#allocation18_spill]]  ;;  %vm1092_vm2 = vcmask 1043456   ;;  %vm1088_vm3 = vcmask 64512   ;;  %vm1965_vm4 = vcmask 130048   ;;  %vm3892_vm5 = vcmask 254976  }
  0x4e   :  { %s6118_s29 = sld [smem:[#allocation20_spill]]  ;;  %s6119_s6 = sld [smem:[#allocation21_spill]]  ;;  %vm2256_vm6 = vcmask 261120  }
  0x4f   :  { %s6120_s5 = sld [smem:[#allocation22_spill]]  ;;  %s6121_s26 = sld [smem:[#allocation25_spill]] }
  0x50   :  { %s6122_s1 = sld [smem:[#allocation24_spill]]  ;;  %s6123_s0 = sld [smem:[#allocation26_spill]] }
  0x51   :  { %s6124_s2 = sld [smem:[#allocation27_spill]]  ;;  %s6125_s24 = sld [smem:[#allocation16_spill]] }
  0x52   :  { %v4470_v0 = vld [vmem:[%s6114_s7 + $0x4] ss:$16 sps:$4 sm:$0xff]   ;;  %v4472_v1 = vld [vmem:[%s6114_s7] ss:$16 sps:$4 sm:$0xff]   ;;  %v4520_v40 = vld [vmem:[%s6114_s7 + $0xc] ss:$16 sps:$4 sm:$0xff]  }
  0x53   :  { %550 = vmatprep.subr.bf16.mxu1 %v4470_v0  ;;  %v4473_v2 = vld [vmem:[%s6114_s7 + $0x24] ss:$16 sps:$4 sm:$0xff]   ;;  %v4475_v3 = vld [vmem:[%s6114_s7 + $0x20] ss:$16 sps:$4 sm:$0xff]   ;;  %v4568_v31 = vld [vmem:[%s6116_s9 + $0x48] sm:$0xff]  }
  0x54   :  { %551 = vmatpush1.bf16.msra.mxu1 %v4472_v1  ;;  %v4476_v4 = vld [vmem:[%s6114_s7 + $0x44] ss:$16 sps:$4 sm:$0xff]   ;;  %v4478_v5 = vld [vmem:[%s6114_s7 + $0x40] ss:$16 sps:$4 sm:$0xff]   ;;  %v4569_v32 = vld [vmem:[%s6116_s9 + $0x8] sm:$0xff]  }
  0x55   :  { %552 = vmatprep.subr.bf16.mxu1 %v4473_v2  ;;  %v4479_v6 = vld [vmem:[%s6114_s7 + $0x64] ss:$16 sps:$4 sm:$0xff]   ;;  %v4481_v7 = vld [vmem:[%s6114_s7 + $0x60] ss:$16 sps:$4 sm:$0xff]   ;;  %v4518_v41 = vld [vmem:[%s6114_s7 + $0x8] ss:$16 sps:$4 sm:$0xff]  }
  0x56   :  { %v4482_v8 = vld [vmem:[%s6114_s7 + $0x84] ss:$16 sps:$4 sm:$0xff]   ;;  %v4484_v9 = vld [vmem:[%s6114_s7 + $0x80] ss:$16 sps:$4 sm:$0xff]   ;;  %v4523_v43 = vld [vmem:[%s6114_s7 + $0x2c] ss:$16 sps:$4 sm:$0xff]  }
  0x57   :  { %v4485_v10 = vld [vmem:[%s6114_s7 + $0xa4] ss:$16 sps:$4 sm:$0xff]   ;;  %v4487_v11 = vld [vmem:[%s6114_s7 + $0xa0] ss:$16 sps:$4 sm:$0xff]   ;;  %v4521_v44 = vld [vmem:[%s6114_s7 + $0x28] ss:$16 sps:$4 sm:$0xff]  }
  0x58   :  { %553 = vmatpush1.bf16.msra.mxu1 %v4475_v3  ;;  %v4488_v12 = vld [vmem:[%s6114_s7 + $0xc4] ss:$16 sps:$4 sm:$0xff]   ;;  %v3933_v13 = vld.sshfl [vmem:[%s6115_s10] sm:$0x33 pattern:$0x76325410] }
  0x59   :  { %554 = vmatprep.subr.bf16.mxu1 %v4476_v4  ;;  %v139_v14 = vcombine.high %v3933_v13, %v3933_v13  ;;  %v4490_v15 = vld [vmem:[%s6114_s7 + $0xc0] ss:$16 sps:$4 sm:$0xff]   ;;  %v4491_v16 = vld [vmem:[%s6114_s7 + $0xe4] ss:$16 sps:$4 sm:$0xff]   ;;  %v5414_v42 = vpack.c.bf16 %v3933_v13, %v3933_v13  ;;  %v4526_v45 = vld [vmem:[%s6114_s7 + $0x4c] ss:$16 sps:$4 sm:$0xff]  }
  0x5a   :  { %v4493_v18 = vld [vmem:[%s6114_s7 + $0xe0] ss:$16 sps:$4 sm:$0xff]   ;;  %v4494_v19 = vld [vmem:[%s6114_s7 + $0x104] ss:$16 sps:$4 sm:$0xff]   ;;  %v4524_v46 = vld [vmem:[%s6114_s7 + $0x48] ss:$16 sps:$4 sm:$0xff]  }
  0x5b   :  { %v143_v17 = vpack.c.bf16 %v139_v14, %v139_v14  ;;  %v4496_v20 = vld [vmem:[%s6114_s7 + $0x100] ss:$16 sps:$4 sm:$0xff]   ;;  %v4497_v21 = vld [vmem:[%s6114_s7 + $0x124] ss:$16 sps:$4 sm:$0xff]   ;;  %v4529_v47 = vld [vmem:[%s6114_s7 + $0x6c] ss:$16 sps:$4 sm:$0xff]  }
  0x5c   :  { %555 = vmatpush1.bf16.msra.mxu1 %v4478_v5  ;;  %v4499_v22 = vld [vmem:[%s6114_s7 + $0x120] ss:$16 sps:$4 sm:$0xff]   ;;  %v4500_v23 = vld [vmem:[%s6114_s7 + $0x144] ss:$16 sps:$4 sm:$0xff]   ;;  %v4527_v48 = vld [vmem:[%s6114_s7 + $0x68] ss:$16 sps:$4 sm:$0xff]  }
  0x5d   :  { %556 = vmatprep.subr.bf16.mxu1 %v4479_v6  ;;  %582 = vmatprep.mubr.bf16.mxu1 %v143_v17  ;;  %v4502_v24 = vld [vmem:[%s6114_s7 + $0x140] ss:$16 sps:$4 sm:$0xff]   ;;  %v4503_v25 = vld [vmem:[%s6114_s7 + $0x164] ss:$16 sps:$4 sm:$0xff]   ;;  %v4532_v49 = vld [vmem:[%s6114_s7 + $0x8c] ss:$16 sps:$4 sm:$0xff]  }
  0x5e   :  { %v4505_v26 = vld [vmem:[%s6114_s7 + $0x160] ss:$16 sps:$4 sm:$0xff]   ;;  %v4506_v27 = vld [vmem:[%s6114_s7 + $0x184] ss:$16 sps:$4 sm:$0xff]   ;;  %v4530_v50 = vld [vmem:[%s6114_s7 + $0x88] ss:$16 sps:$4 sm:$0xff]  }
  0x5f   :  { %v4566_v28 = vld [vmem:[%s6116_s9 + $0x40] sm:$0xff]   ;;  %v4570_v34 = vld [vmem:[%s6116_s9 + $0x50] sm:$0xff]   ;;  %v4535_v51 = vld [vmem:[%s6114_s7 + $0xac] ss:$16 sps:$4 sm:$0xff]  }
  0x60   :  { %557 = vmatpush1.bf16.msra.mxu1 %v4481_v7  ;;  %v4508_v29 = vld [vmem:[%s6114_s7 + $0x180] ss:$16 sps:$4 sm:$0xff]   ;;  %4314 = vmatprep.subr.bf16.mxu0 %v4566_v28  ;;  %v4509_v33 = vld [vmem:[%s6114_s7 + $0x1a4] ss:$16 sps:$4 sm:$0xff]   ;;  %v4533_v52 = vld [vmem:[%s6114_s7 + $0xa8] ss:$16 sps:$4 sm:$0xff]  }
  0x61   :  { %558 = vmatprep.subr.bf16.mxu1 %v4482_v8  ;;  %v4567_v30 = vld [vmem:[%s6116_s9] sm:$0xff]   ;;  %v4538_v53 = vld [vmem:[%s6114_s7 + $0xcc] ss:$16 sps:$4 sm:$0xff]   ;;  %v4536_v54 = vld [vmem:[%s6114_s7 + $0xc8] ss:$16 sps:$4 sm:$0xff]  }
  0x62   :  { %4315 = vmatpush3.bf16.msra.mxu0 %v4567_v30  ;;  %v4511_v35 = vld [vmem:[%s6114_s7 + $0x1a0] ss:$16 sps:$4 sm:$0xff]   ;;  %v4512_v36 = vld [vmem:[%s6114_s7 + $0x1c4] ss:$16 sps:$4 sm:$0xff]   ;;  %v4541_v55 = vld [vmem:[%s6114_s7 + $0xec] ss:$16 sps:$4 sm:$0xff]  }
  0x63   :  { %4316 = vmatprep.subr.bf16.mxu0 %v4568_v31  ;;  %v4514_v37 = vld [vmem:[%s6114_s7 + $0x1c0] ss:$16 sps:$4 sm:$0xff]   ;;  %v4515_v38 = vld [vmem:[%s6114_s7 + $0x1e4] ss:$16 sps:$4 sm:$0xff]   ;;  %v4539_v56 = vld [vmem:[%s6114_s7 + $0xe8] ss:$16 sps:$4 sm:$0xff]  }
  0x64   :  { %559 = vmatpush1.bf16.msra.mxu1 %v4484_v9  ;;  %v4517_v39 = vld [vmem:[%s6114_s7 + $0x1e0] ss:$16 sps:$4 sm:$0xff]   ;;  %v4544_v57 = vld [vmem:[%s6114_s7 + $0x10c] ss:$16 sps:$4 sm:$0xff]   ;;  %v4542_v58 = vld [vmem:[%s6114_s7 + $0x108] ss:$16 sps:$4 sm:$0xff]  }
  0x65   :  { %560 = vmatprep.subr.bf16.mxu1 %v4485_v10  ;;  %v4547_v59 = vld [vmem:[%s6114_s7 + $0x12c] ss:$16 sps:$4 sm:$0xff]   ;;  %v4545_v60 = vld [vmem:[%s6114_s7 + $0x128] ss:$16 sps:$4 sm:$0xff]   ;;  %v4571_v9 = vld [vmem:[%s6116_s9 + $0x10] sm:$0xff]  }
  0x66   :  { %4317 = vmatpush3.bf16.msra.mxu0 %v4569_v32  ;;  %v4550_v61 = vld [vmem:[%s6114_s7 + $0x14c] ss:$16 sps:$4 sm:$0xff]   ;;  %v4548_v62 = vld [vmem:[%s6114_s7 + $0x148] ss:$16 sps:$4 sm:$0xff]   ;;  %v4575_v13 = vld [vmem:[%s6116_s9 + $0x20] sm:$0xff]  }
  0x67   :  { %4318 = vmatprep.subr.bf16.mxu0 %v4570_v34  ;;  %v4553_v63 = vld [vmem:[%s6114_s7 + $0x16c] ss:$16 sps:$4 sm:$0xff]   ;;  %v4551_v0 = vld [vmem:[%s6114_s7 + $0x168] ss:$16 sps:$4 sm:$0xff]   ;;  %v4590_v28 = vld [vmem:[%s6116_s9 + $0xe0] sm:$0xff]  }
  0x68   :  { %561 = vmatpush1.bf16.msra.mxu1 %v4487_v11  ;;  %v4556_v1 = vld [vmem:[%s6114_s7 + $0x18c] ss:$16 sps:$4 sm:$0xff]   ;;  %v4554_v2 = vld [vmem:[%s6114_s7 + $0x188] ss:$16 sps:$4 sm:$0xff]   ;;  %v4594_v32 = vld [vmem:[%s6116_s9 + $0xf0] sm:$0xff]  }
  0x69   :  { %562 = vmatprep.subr.bf16.mxu1 %v4488_v12  ;;  %v4559_v3 = vld [vmem:[%s6114_s7 + $0x1ac] ss:$16 sps:$4 sm:$0xff]   ;;  %v4557_v4 = vld [vmem:[%s6114_s7 + $0x1a8] ss:$16 sps:$4 sm:$0xff]   ;;  %v4574_v12 = vld [vmem:[%s6116_s9 + $0x60] sm:$0xff]  }
  0x6a   :  { %v4562_v5 = vld [vmem:[%s6114_s7 + $0x1cc] ss:$16 sps:$4 sm:$0xff]   ;;  %v4560_v6 = vld [vmem:[%s6114_s7 + $0x1c8] ss:$16 sps:$4 sm:$0xff]   ;;  %4319 = vmatpush3.bf16.msra.mxu0 %v4571_v9 }
  0x6b   :  { %v4565_v7 = vld [vmem:[%s6114_s7 + $0x1ec] ss:$16 sps:$4 sm:$0xff]   ;;  %v4563_v8 = vld [vmem:[%s6114_s7 + $0x1e8] ss:$16 sps:$4 sm:$0xff]  }
  0x6c   :  { %563 = vmatpush1.bf16.msra.mxu1 %v4490_v15  ;;  %v4572_v10 = vld [vmem:[%s6116_s9 + $0x58] sm:$0xff]   ;;  %v4576_v14 = vld [vmem:[%s6116_s9 + $0x68] sm:$0xff]  }
  0x6d   :  { %564 = vmatprep.subr.bf16.mxu1 %v4491_v16  ;;  %v4573_v11 = vld [vmem:[%s6116_s9 + $0x18] sm:$0xff]   ;;  %4320 = vmatprep.subr.bf16.mxu0 %v4572_v10  ;;  %v4577_v15 = vld [vmem:[%s6116_s9 + $0x28] sm:$0xff]   ;;  %v4578_v16 = vld [vmem:[%s6116_s9 + $0x70] sm:$0xff]  }
  0x6e   :  { %4321 = vmatpush3.bf16.msra.mxu0 %v4573_v11  ;;  %v4592_v30 = vld [vmem:[%s6116_s9 + $0xe8] sm:$0xff]   ;;  %v4596_v34 = vld [vmem:[%s6116_s9 + $0xf8] sm:$0xff]  }
  0x6f   :  { %4322 = vmatprep.subr.bf16.mxu0 %v4574_v12  ;;  %v4593_v31 = vld [vmem:[%s6116_s9 + $0xa8] sm:$0xff]  }
  0x70   :  { %565 = vmatpush1.bf16.msra.mxu1 %v4493_v18  ;;  %v4580_v18 = vld [vmem:[%s6116_s9 + $0x78] sm:$0xff]  }
  0x71   :  { %566 = vmatprep.subr.bf16.mxu1 %v4494_v19  ;;  %v4581_v19 = vld [vmem:[%s6116_s9 + $0x38] sm:$0xff]  }
  0x72   :  { %4323 = vmatpush3.bf16.msra.mxu0 %v4575_v13 }
  0x73   :  { %4324 = vmatprep.subr.bf16.mxu0 %v4576_v14 }
  0x74   :  { %567 = vmatpush1.bf16.msra.mxu1 %v4496_v20  ;;  %v4582_v20 = vld [vmem:[%s6116_s9 + $0xc0] sm:$0xff]  }
  0x75   :  { %568 = vmatprep.subr.bf16.mxu1 %v4497_v21  ;;  %v4583_v21 = vld [vmem:[%s6116_s9 + $0x80] sm:$0xff]  }
  0x76   :  { %4325 = vmatpush3.bf16.msra.mxu0 %v4577_v15 }
  0x77   :  { %4326 = vmatprep.subr.bf16.mxu0 %v4578_v16 }
  0x78   :  { %569 = vmatpush1.bf16.msra.mxu1 %v4499_v22  ;;  %v4584_v22 = vld [vmem:[%s6116_s9 + $0xc8] sm:$0xff]  }
  0x79   :  { %570 = vmatprep.subr.bf16.mxu1 %v4500_v23  ;;  %v4585_v23 = vld [vmem:[%s6116_s9 + $0x88] sm:$0xff]  }
  0x7c   :  { %571 = vmatpush1.bf16.msra.mxu1 %v4502_v24  ;;  %v4586_v24 = vld [vmem:[%s6116_s9 + $0xd0] sm:$0xff]  }
  0x7d   :  { %572 = vmatprep.subr.bf16.mxu1 %v4503_v25  ;;  %v4587_v25 = vld [vmem:[%s6116_s9 + $0x90] sm:$0xff]  }
  0x80   :  { %573 = vmatpush1.bf16.msra.mxu1 %v4505_v26  ;;  %v4588_v26 = vld [vmem:[%s6116_s9 + $0xd8] sm:$0xff]  }
  0x81   :  { %574 = vmatprep.subr.bf16.mxu1 %v4506_v27  ;;  %v4589_v27 = vld [vmem:[%s6116_s9 + $0x98] sm:$0xff]  }
  0x84   :  { %575 = vmatpush1.bf16.msra.mxu1 %v4508_v29  ;;  %v4591_v29 = vld [vmem:[%s6116_s9 + $0xa0] sm:$0xff]  }
  0x85   :  { %576 = vmatprep.subr.bf16.mxu1 %v4509_v33  ;;  %v4595_v33 = vld [vmem:[%s6116_s9 + $0xb0] sm:$0xff]  }
  0x88   :  { %577 = vmatpush1.bf16.msra.mxu1 %v4511_v35  ;;  %v4597_v35 = vld [vmem:[%s6116_s9 + $0xb8] sm:$0xff]  }
  0x89   :  { %578 = vmatprep.subr.bf16.mxu1 %v4512_v36  ;;  %v210_v36 = vlaneseq }
  0x8c   :  { %579 = vmatpush1.bf16.msra.mxu1 %v4514_v37  ;;  %v5589_v37 = vshrl.u32 %v210_v36, 7 }
  0x8d   :  { %580 = vmatprep.subr.bf16.mxu1 %v4515_v38 }
  0x8e   :  { %v5592_v38 = vsub.s32 0, %v5589_v37 }
  0x90   :  { %581 = vmatpush1.bf16.msra.mxu1 %v4517_v39  ;;  %v208_v39 = vld [vmem:[%s6117_s3] sm:$0xf] }
  0x91   :  { %591 = vmatprep.subr.bf16.mxu1 %v4520_v40  ;;  %v5598_v40 = vsub.s32 1, %v5589_v37 }
  0x93   :  { %583 = vmatmul.mubr.bf16.vlgmr.msra.gmra.mrb[0].mxu1 %v5414_v42 }
  0x94   :  { %592 = vmatpush1.bf16.msra.mxu1 %v4518_v41  ;;  %623 = vmatprep.mubr.bf16.mxu1 %v143_v17  ;;  %v4579_v17 = vld [vmem:[%s6116_s9 + $0x30] sm:$0xff]   ;;  %v213_v41 = vrot.slane %v208_v39, %v5592_v38 }
  0x95   :  { %593 = vmatprep.subr.bf16.mxu1 %v4523_v43  ;;  %4327 = vmatpush3.bf16.msra.mxu0 %v4579_v17 }
  0x96   :  { %4328 = vmatprep.subr.bf16.mxu0 %v4580_v18 }
  0x98   :  { %594 = vmatpush1.bf16.msra.mxu1 %v4521_v44 }
  0x99   :  { %595 = vmatprep.subr.bf16.mxu1 %v4526_v45  ;;  %4329 = vmatpush3.bf16.msra.mxu0 %v4581_v19  ;;  %v220_v19 = vsub.s32 2, %v5589_v37 }
  0x9c   :  { %596 = vmatpush1.bf16.msra.mxu1 %v4524_v46 }
  0x9d   :  { %597 = vmatprep.subr.bf16.mxu1 %v4529_v47 }
  0xa0   :  { %598 = vmatpush1.bf16.msra.mxu1 %v4527_v48 }
  0xa1   :  { %599 = vmatprep.subr.bf16.mxu1 %v4532_v49 }
  0xa4   :  { %600 = vmatpush1.bf16.msra.mxu1 %v4530_v50 }
  0xa5   :  { %601 = vmatprep.subr.bf16.mxu1 %v4535_v51 }
  0xa8   :  { %602 = vmatpush1.bf16.msra.mxu1 %v4533_v52 }
  0xa9   :  { %603 = vmatprep.subr.bf16.mxu1 %v4538_v53 }
  0xac   :  { %604 = vmatpush1.bf16.msra.mxu1 %v4536_v54 }
  0xad   :  { %605 = vmatprep.subr.bf16.mxu1 %v4541_v55 }
  0xb0   :  { %606 = vmatpush1.bf16.msra.mxu1 %v4539_v56 }
  0xb1   :  { %607 = vmatprep.subr.bf16.mxu1 %v4544_v57 }
  0xb4   :  { %608 = vmatpush1.bf16.msra.mxu1 %v4542_v58 }
  0xb5   :  { %609 = vmatprep.subr.bf16.mxu1 %v4547_v59 }
  0xb8   :  { %610 = vmatpush1.bf16.msra.mxu1 %v4545_v60 }
  0xb9   :  { %611 = vmatprep.subr.bf16.mxu1 %v4550_v61 }
  0xbc   :  { %612 = vmatpush1.bf16.msra.mxu1 %v4548_v62 }
  0xbd   :  { %613 = vmatprep.subr.bf16.mxu1 %v4553_v63 }
  0xc0   :  { %614 = vmatpush1.bf16.msra.mxu1 %v4551_v0 }
  0xc1   :  { %615 = vmatprep.subr.bf16.mxu1 %v4556_v1 }
  0xc4   :  { %616 = vmatpush1.bf16.msra.mxu1 %v4554_v2 }
  0xc5   :  { %617 = vmatprep.subr.bf16.mxu1 %v4559_v3 }
  0xc8   :  { %618 = vmatpush1.bf16.msra.mxu1 %v4557_v4 }
  0xc9   :  { %619 = vmatprep.subr.bf16.mxu1 %v4562_v5 }
  0xcc   :  { %620 = vmatpush1.bf16.msra.mxu1 %v4560_v6 }
  0xcd   :  { %621 = vmatprep.subr.bf16.mxu1 %v4565_v7 }
  0xd0   :  { %622 = vmatpush1.bf16.msra.mxu1 %v4563_v8 }
  0xd1   :  { %4336 = vmatprep.subr.bf16.mxu1 %v4582_v20  ;;  %v224_v20 = vsub.s32 3, %v5589_v37 }
  0xd3   :  { %624 = vmatmul.mubr.bf16.vlgmr.msra.gmra.mrb[4].mxu1 %v5414_v42  ;;  %v217_v42 = vrot.slane %v208_v39, %v5598_v40 }
  0xd4   :  { %4337 = vmatpush3.bf16.msra.mxu1 %v4583_v21  ;;  %v221_v21 = vrot.slane %v208_v39, %v220_v19 }
  0xd5   :  { %4338 = vmatprep.subr.bf16.mxu1 %v4584_v22  ;;  %v225_v22 = vrot.slane %v208_v39, %v224_v20 }
  0xd8   :  { %4339 = vmatpush3.bf16.msra.mxu1 %v4585_v23 }
  0xd9   :  { %4340 = vmatprep.subr.bf16.mxu1 %v4586_v24 }
  0xdc   :  { %4341 = vmatpush3.bf16.msra.mxu1 %v4587_v25 }
  0xdd   :  { %4342 = vmatprep.subr.bf16.mxu1 %v4588_v26 }
  0xe0   :  { %4343 = vmatpush3.bf16.msra.mxu1 %v4589_v27 }
  0xe1   :  { %4344 = vmatprep.subr.bf16.mxu1 %v4590_v28 }
  0xe4   :  { %4345 = vmatpush3.bf16.msra.mxu1 %v4591_v29 }
  0xe5   :  { %4346 = vmatprep.subr.bf16.mxu1 %v4592_v30 }
  0xe8   :  { %4347 = vmatpush3.bf16.msra.mxu1 %v4593_v31 }
  0xe9   :  { %4348 = vmatprep.subr.bf16.mxu1 %v4594_v32 }
  0xec   :  { %4349 = vmatpush3.bf16.msra.mxu1 %v4595_v33 }
  0xed   :  { %4350 = vmatprep.subr.bf16.mxu1 %v4596_v34 }
  0xf0   :  { %4351 = vmatpush3.bf16.msra.mxu1 %v4597_v35 }
 0x166   :  { %v584_v43 = vpop.f32.mrb[0].mxu1 }
 0x167   :  { %v5602_v44 = vadd.f32 %v584_v43, %v213_v41  ;;  %v586_v45 = vpop.f32.mrb[1].mxu1 }
 0x168   :  { %v5604_v46 = vadd.f32 %v586_v45, %v217_v42  ;;  %v588_v47 = vpop.f32.mrb[2].mxu1 }
 0x169   :  { %v633_v48 = vsel %vm632_vm0, %v5602_v44, 0.0  ;;  %v661_v49 = vmul.f32 %v5602_v44, %v5602_v44  ;;  %v589_v50 = vpop.f32.mrb[3].mxu1 }
 0x16a   :  { %v634_v51 = vrot.slane %v633_v48, 4  ;;  %v640_v52 = vsel %vm632_vm0, %v5604_v46, 0.0  ;;  %v662_v53 = vmul.f32 %v5604_v46, %v5604_v46 }
 0x16b   :  { %v665_v54 = vsel %vm632_vm0, %v661_v49, 0.0  ;;  %v641_v55 = vrot.slane %v640_v52, 4 }
 0x16c   :  { %v635_v56 = vadd.f32 %v634_v51, %v633_v48  ;;  %v666_v57 = vrot.slane %v665_v54, 4  ;;  %v672_v58 = vsel %vm632_vm0, %v662_v53, 0.0 }
 0x16d   :  { %v642_v59 = vadd.f32 %v641_v55, %v640_v52  ;;  %v673_v60 = vrot.slane %v672_v58, 4 }
 0x16e   :  { %v636_v61 = vrot.slane %v635_v56, 2  ;;  %v667_v62 = vadd.f32 %v666_v57, %v665_v54 }
 0x16f   :  { %v643_v63 = vrot.slane %v642_v59, 2  ;;  %v674_v0 = vadd.f32 %v673_v60, %v672_v58 }
 0x170   :  { %v637_v1 = vadd.f32 %v636_v61, %v635_v56  ;;  %v668_v2 = vrot.slane %v667_v62, 2 }
 0x171   :  { %v644_v3 = vadd.f32 %v643_v63, %v642_v59  ;;  %v675_v4 = vrot.slane %v674_v0, 2 }
 0x172   :  { %v638_v5 = vrot.slane %v637_v1, 1  ;;  %v669_v6 = vadd.f32 %v668_v2, %v667_v62 }
 0x173   :  { %v645_v7 = vrot.slane %v644_v3, 1  ;;  %v676_v8 = vadd.f32 %v675_v4, %v674_v0  ;;  %v1076_v4 = vld [vmem:[%s6118_s29] sm:$0xff] }
 0x174   :  { %v670_v9 = vrot.slane %v669_v6, 1  ;;  %v639_v11 = vadd.f32 %v638_v5, %v637_v1  ;;  %v1077_v5 = vld [vmem:[%s6118_s29 + $0x8] sm:$0xff] }
 0x175   :  { %v677_v10 = vrot.slane %v676_v8, 1  ;;  %v646_v13 = vadd.f32 %v645_v7, %v644_v3  ;;  %v4030_v7 = vcombine.low %v1076_v4, %v1076_v4 }
 0x176   :  { %v671_v12 = vadd.f32 %v670_v9, %v669_v6  ;;  %v4031_v6 = vcombine.high %v1076_v4, %v1076_v4  ;;  %v4032_v9 = vcombine.low %v1077_v5, %v1077_v5  ;;  %v4625_v4 = vld [vmem:[#allocation2 + $0x74] ss:$8 sps:$4 sm:$0xff]  }
 0x177   :  { %v678_v14 = vadd.f32 %v677_v10, %v676_v8  ;;  %v4033_v8 = vcombine.high %v1077_v5, %v1077_v5  ;;  %v1094_v10 = vsel %vm1092_vm2, %v4030_v7, 0  ;;  %v4623_v5 = vld [vmem:[#allocation2 + $0x70] ss:$8 sps:$4 sm:$0xff]   ;;  %v4626_v7 = vld [vmem:[#allocation2 + $0x80] ss:$8 sps:$4 sm:$0xff]  }
 0x178   :  { %v694_v15 = vsel %vm693_vm1, %v639_v11, %v671_v12  ;;  %4034 = vmatprep.subr.msk.bf16.mxu0 %vm1092_vm2, %v4031_v6  ;;  %v1100_v11 = vsel %vm1092_vm2, %v4032_v9, 0  ;;  %v5108_v12 = vmov 0   ;;  %v4628_v6 = vld [vmem:[#allocation2 + $0x84] ss:$8 sps:$4 sm:$0xff]   ;;  %v4629_v9 = vld [vmem:[#allocation2 + $0x90] ss:$8 sps:$4 sm:$0xff]  }
 0x179   :  { %v695_v16 = vsel %vm693_vm1, %v646_v13, %v678_v14  ;;  %v698_v18 = vpack.c.bf16 %v694_v15, %v694_v15  ;;  %4036 = vmatprep.subr.msk.bf16.mxu1 %vm1092_vm2, %v4033_v8  ;;  %v4604_v13 = vld [vmem:[#allocation2 + $0x4] ss:$8 sps:$4 sm:$0xff]   ;;  %v4631_v8 = vld [vmem:[#allocation2 + $0x94] ss:$8 sps:$4 sm:$0xff]  }
 0x17a   :  { %v699_v17 = vpack.c.bf16 %v695_v16, %v695_v16 }
 0x17c   :  { %990 = vmatprep.mubr.bf16.mxu0 %v699_v17 }
 0x17d   :  { %991 = vmatmul.mubr.bf16.vlgmr.msra.gmra.mrb[0].mxu0 %v698_v18 }
 0x17e   :  { %1106 = vmatpush1.bf16.msra.mxu0 %v1094_v10  ;;  %1137 = vmatprep.mubr.bf16.mxu0 %v5108_v12  ;;  %v4634_v10 = vld [vmem:[#allocation2 + $0xa4] ss:$8 sps:$4 sm:$0xff]  }
 0x17f   :  { %1631 = vmatprep.subr.bf16.mxu0 %v4604_v13  ;;  %v4637_v13 = vld [vmem:[#allocation2 + $0xb4] ss:$8 sps:$4 sm:$0xff]  }
 0x1a6   :  { %v625_v23 = vpop.f32.mrb[4].mxu1 }
 0x1a7   :  { %v5624_v24 = vadd.f32 %v625_v23, %v221_v21  ;;  %v627_v25 = vpop.f32.mrb[5].mxu1 }
 0x1a8   :  { %v5626_v26 = vadd.f32 %v627_v25, %v225_v22  ;;  %v629_v27 = vpop.f32.mrb[6].mxu1 }
 0x1a9   :  { %v647_v28 = vsel %vm632_vm0, %v5624_v24, 0.0  ;;  %v663_v29 = vmul.f32 %v5624_v24, %v5624_v24  ;;  %v630_v30 = vpop.f32.mrb[7].mxu1 }
 0x1aa   :  { %v648_v31 = vrot.slane %v647_v28, 4  ;;  %v654_v32 = vsel %vm632_vm0, %v5626_v26, 0.0  ;;  %v664_v33 = vmul.f32 %v5626_v26, %v5626_v26 }
 0x1ab   :  { %v679_v34 = vsel %vm632_vm0, %v663_v29, 0.0  ;;  %v655_v35 = vrot.slane %v654_v32, 4 }
 0x1ac   :  { %v649_v36 = vadd.f32 %v648_v31, %v647_v28  ;;  %v680_v39 = vrot.slane %v679_v34, 4  ;;  %v686_v41 = vsel %vm632_vm0, %v664_v33, 0.0 }
 0x1ad   :  { %v656_v42 = vadd.f32 %v655_v35, %v654_v32  ;;  %v687_v43 = vrot.slane %v686_v41, 4 }
 0x1ae   :  { %v650_v45 = vrot.slane %v649_v36, 2  ;;  %v681_v47 = vadd.f32 %v680_v39, %v679_v34  ;;  %v5109_v34 = vmov 1966171168  }
 0x1af   :  { %v657_v48 = vrot.slane %v656_v42, 2  ;;  %v688_v49 = vadd.f32 %v687_v43, %v686_v41  ;;  %v1049_v35 = vunpack.c.l.s4 %v5109_v34 }
 0x1b0   :  { %v651_v50 = vadd.f32 %v650_v45, %v649_v36  ;;  %v682_v51 = vrot.slane %v681_v47, 2  ;;  %v1044_v45 = vld [vmem:[%s6119_s6] sm:$0x1] }
 0x1b1   :  { %v658_v52 = vadd.f32 %v657_v48, %v656_v42  ;;  %v689_v53 = vrot.slane %v688_v49, 2  ;;  %v1050_v36 = vunpack.c.0.s8 %v1049_v35 }
 0x1b2   :  { %v652_v54 = vrot.slane %v651_v50, 1  ;;  %v683_v55 = vadd.f32 %v682_v51, %v681_v47 }
 0x1b3   :  { %v659_v56 = vrot.slane %v658_v52, 1  ;;  %v690_v57 = vadd.f32 %v689_v53, %v688_v49  ;;  %v5653_v39 = vsub.s32 %v1050_v36, %v5589_v37  ;;  %v1065_v49 = vld [vmem:[%s6120_s5] sm:$0x1] }
 0x1b4   :  { %v684_v58 = vrot.slane %v683_v55, 1  ;;  %v653_v60 = vadd.f32 %v652_v54, %v651_v50  ;;  %v4602_v54 = vld [vmem:[#allocation2] ss:$8 sps:$4 sm:$0xff]  }
 0x1b5   :  { %v691_v59 = vrot.slane %v690_v57, 1  ;;  %v660_v62 = vadd.f32 %v659_v56, %v658_v52  ;;  %v4607_v56 = vld [vmem:[#allocation2 + $0x14] ss:$8 sps:$4 sm:$0xff]  }
 0x1b6   :  { %v685_v61 = vadd.f32 %v684_v58, %v683_v55  ;;  %v4610_v58 = vld [vmem:[#allocation2 + $0x24] ss:$8 sps:$4 sm:$0xff]  }
 0x1b7   :  { %v692_v63 = vadd.f32 %v691_v59, %v690_v57  ;;  %v4605_v57 = vld [vmem:[#allocation2 + $0x10] ss:$8 sps:$4 sm:$0xff]   ;;  %v4608_v59 = vld [vmem:[#allocation2 + $0x20] ss:$8 sps:$4 sm:$0xff]  }
 0x1b8   :  { %v696_v0 = vsel %vm693_vm1, %v653_v60, %v685_v61  ;;  %v4613_v60 = vld [vmem:[#allocation2 + $0x34] ss:$8 sps:$4 sm:$0xff]   ;;  %v4611_v61 = vld [vmem:[#allocation2 + $0x30] ss:$8 sps:$4 sm:$0xff]  }
 0x1b9   :  { %v697_v1 = vsel %vm693_vm1, %v660_v62, %v692_v63  ;;  %v700_v3 = vpack.c.bf16 %v696_v0, %v696_v0  ;;  %v4616_v62 = vld [vmem:[#allocation2 + $0x44] ss:$8 sps:$4 sm:$0xff]   ;;  %v4614_v63 = vld [vmem:[#allocation2 + $0x40] ss:$8 sps:$4 sm:$0xff]   ;;  %v4619_v0 = vld [vmem:[#allocation2 + $0x54] ss:$8 sps:$4 sm:$0xff]  }
 0x1ba   :  { %v701_v2 = vpack.c.bf16 %v697_v1, %v697_v1  ;;  %v4617_v1 = vld [vmem:[#allocation2 + $0x50] ss:$8 sps:$4 sm:$0xff]  }
 0x1bc   :  { %1030 = vmatprep.mubr.bf16.mxu1 %v701_v2  ;;  %v4622_v2 = vld [vmem:[#allocation2 + $0x64] ss:$8 sps:$4 sm:$0xff]  }
 0x1bd   :  { %1031 = vmatmul.mubr.bf16.vlgmr.msra.gmra.mrb[8].mxu1 %v700_v3  ;;  %v4620_v3 = vld [vmem:[#allocation2 + $0x60] ss:$8 sps:$4 sm:$0xff]  }
 0x1be   :  { %1147 = vmatpush1.bf16.msra.mxu1 %v1100_v11  ;;  %1178 = vmatprep.mubr.bf16.mxu1 %v5108_v12  ;;  %v4632_v11 = vld [vmem:[#allocation2 + $0xa0] ss:$8 sps:$4 sm:$0xff]  }
 0x250   :  { %v4330_v14 = vpop.f32.mrb[0].mxu0 }
 0x251   :  { %v4331_v15 = vpop.f32.mrb[1].mxu0 }
 0x252   :  { %v4332_v16 = vadd.f32 %v4331_v15, %v4330_v14  ;;  %v4333_v17 = vpop.f32.mrb[2].mxu0  ;;  %v4635_v14 = vld [vmem:[#allocation2 + $0xb0] ss:$8 sps:$4 sm:$0xff]   ;;  %v4640_v15 = vld [vmem:[#allocation2 + $0xc4] ss:$8 sps:$4 sm:$0xff]  }
 0x253   :  { %v4334_v18 = vpop.f32.mrb[3].mxu0  ;;  %v4643_v17 = vld [vmem:[#allocation2 + $0xd4] ss:$8 sps:$4 sm:$0xff]  }
 0x254   :  { %v4641_v18 = vld [vmem:[#allocation2 + $0xd0] ss:$8 sps:$4 sm:$0xff]  }
 0x290   :  { %v4352_v21 = vpop.f32.mrb[8].mxu1 }
 0x291   :  { %v4353_v22 = vpop.f32.mrb[9].mxu1 }
 0x292   :  { %v4354_v23 = vadd.f32 %v4353_v22, %v4352_v21  ;;  %v4355_v25 = vpop.f32.mrb[10].mxu1  ;;  %v4646_v21 = vld [vmem:[#allocation2 + $0xe4] ss:$8 sps:$4 sm:$0xff]   ;;  %v4644_v22 = vld [vmem:[#allocation2 + $0xe0] ss:$8 sps:$4 sm:$0xff]  }
 0x293   :  { %v4356_v27 = vpop.f32.mrb[11].mxu1  ;;  %v4647_v25 = vld [vmem:[#allocation2 + $0xf0] ss:$8 sps:$4 sm:$0xff]  }
 0x294   :  { %v1033_v28 = vadd.f32 %v4354_v23, %v4332_v16  ;;  %v4638_v16 = vld [vmem:[#allocation2 + $0xc0] ss:$8 sps:$4 sm:$0xff]   ;;  %v4649_v23 = vld [vmem:[#allocation2 + $0xf4] ss:$8 sps:$4 sm:$0xff]   ;;  %v4652_v27 = vld [vmem:[#allocation2 + $0x104] ss:$8 sps:$4 sm:$0xff]  }
 0x296   :  { %v1038_v29 = vmul.f32 0.0078125, %v1033_v28  ;;  %v4698_v28 = vld [vmem:[%s6121_s26 + $0x40] sm:$0xff]  }
 0x297   :  { %4358 = vmatprep.subr.bf16.mxu1 %v4698_v28 }
 0x298   :  { %v1039_v30 = vmul.f32 %v1038_v29, %v1038_v29 }
 0x29a   :  { %v1041_v31 = vrot.slane %v1039_v30, 7  ;;  %v4700_v30 = vld [vmem:[%s6121_s26 + $0x48] sm:$0xff]  }
 0x29c   :  { %v1043_v32 = vsub.f32 %v1038_v29, %v1041_v31  ;;  %v4701_v31 = vld [vmem:[%s6121_s26 + $0x8] sm:$0xff]  }
 0x29e   :  { %v1045_v33 = vadd.f32 1e-05, %v1043_v32  ;;  %v4702_v32 = vld [vmem:[%s6121_s26 + $0x50] sm:$0xff]  }
 0x2a0   :  { %4967 = vrsqrt.f32 %v1045_v33 }
 0x2aa   :  { %v4968_v41 = vpop.eup %4967 }
 0x2ab   :  { %v1054_v42 = vrot.slane %v4968_v41, %v5653_v39 }
 0x2ad   :  { %v1055_v43 = vcombine.high %v1054_v42, %v1054_v42 }
 0x2af   :  { %v1062_v47 = vrot.slane %v1055_v43, %v5653_v39 }
 0x2b1   :  { %v1064_v48 = vmul.f32 %v1062_v47, %v1044_v45 }
 0x2b3   :  { %v1066_v50 = vmul.f32 %v1064_v48, %v1038_v29  ;;  %v4699_v29 = vld [vmem:[%s6121_s26] sm:$0xff]  }
 0x2b5   :  { %v1067_v51 = vsub.f32 %v1065_v49, %v1066_v50 }
 0x2b7   :  { %v1072_v52 = vrot.slane %v1067_v51, %v5592_v38 }
 0x2b9   :  { %v1074_v53 = vsel %vm693_vm1, %v1064_v48, %v1072_v52 }
 0x2ba   :  { %v1075_v55 = vpack.c.bf16 %v1074_v53, %v1074_v53 }
 0x2bc   :  { %4035 = vmatmul.mubr.msk.bf16.vlgmr.msra.gmra.mrb[4].mxu0 %vm1088_vm3, %v1075_v55  ;;  %4037 = vmatmul.mubr.msk.bf16.vlgmr.msra.gmra.mrb[12].mxu1 %vm1088_vm3, %v1075_v55 }
 0x2bd   :  { %1632 = vmatpush1.bf16.msra.mxu0 %v4602_v54  ;;  %4359 = vmatpush3.bf16.msra.mxu1 %v4699_v29  ;;  %v4691_v29 = vld [vmem:[#allocation2 + $0x1d4] ss:$8 sps:$4 sm:$0xff]  }
 0x2be   :  { %1633 = vmatprep.subr.bf16.mxu0 %v4607_v56  ;;  %4360 = vmatprep.subr.bf16.mxu1 %v4700_v30  ;;  %v4689_v30 = vld [vmem:[#allocation2 + $0x1d0] ss:$8 sps:$4 sm:$0xff]  }
 0x2c1   :  { %1634 = vmatpush1.bf16.msra.mxu0 %v4605_v57  ;;  %4361 = vmatpush3.bf16.msra.mxu1 %v4701_v31 }
 0x2c2   :  { %1635 = vmatprep.subr.bf16.mxu0 %v4610_v58  ;;  %4362 = vmatprep.subr.bf16.mxu1 %v4702_v32  ;;  %v4694_v32 = vld [vmem:[#allocation2 + $0x1e4] ss:$8 sps:$4 sm:$0xff]  }
 0x2c5   :  { %1636 = vmatpush1.bf16.msra.mxu0 %v4608_v59 }
 0x2c6   :  { %1637 = vmatprep.subr.bf16.mxu0 %v4613_v60 }
 0x2c9   :  { %1638 = vmatpush1.bf16.msra.mxu0 %v4611_v61 }
 0x2ca   :  { %1639 = vmatprep.subr.bf16.mxu0 %v4616_v62 }
 0x2cd   :  { %1640 = vmatpush1.bf16.msra.mxu0 %v4614_v63 }
 0x2ce   :  { %1641 = vmatprep.subr.bf16.mxu0 %v4619_v0  ;;  %v4655_v0 = vld [vmem:[#allocation2 + $0x114] ss:$8 sps:$4 sm:$0xff]  }
 0x2d1   :  { %1642 = vmatpush1.bf16.msra.mxu0 %v4617_v1 }
 0x2d2   :  { %1643 = vmatprep.subr.bf16.mxu0 %v4622_v2  ;;  %v4656_v2 = vld [vmem:[#allocation2 + $0x120] ss:$8 sps:$4 sm:$0xff]  }
 0x2d5   :  { %1644 = vmatpush1.bf16.msra.mxu0 %v4620_v3  ;;  %v4661_v3 = vld [vmem:[#allocation2 + $0x134] ss:$8 sps:$4 sm:$0xff]  }
 0x2d6   :  { %1645 = vmatprep.subr.bf16.mxu0 %v4625_v4  ;;  %v4659_v4 = vld [vmem:[#allocation2 + $0x130] ss:$8 sps:$4 sm:$0xff]  }
 0x2d9   :  { %1646 = vmatpush1.bf16.msra.mxu0 %v4623_v5  ;;  %v4664_v5 = vld [vmem:[#allocation2 + $0x144] ss:$8 sps:$4 sm:$0xff]  }
 0x2da   :  { %1647 = vmatprep.subr.bf16.mxu0 %v4628_v6  ;;  %v4662_v6 = vld [vmem:[#allocation2 + $0x140] ss:$8 sps:$4 sm:$0xff]  }
 0x2dd   :  { %1648 = vmatpush1.bf16.msra.mxu0 %v4626_v7  ;;  %v4667_v7 = vld [vmem:[#allocation2 + $0x154] ss:$8 sps:$4 sm:$0xff]  }
 0x2de   :  { %1649 = vmatprep.subr.bf16.mxu0 %v4631_v8  ;;  %v4665_v8 = vld [vmem:[#allocation2 + $0x150] ss:$8 sps:$4 sm:$0xff]  }
 0x2e1   :  { %1650 = vmatpush1.bf16.msra.mxu0 %v4629_v9  ;;  %v4670_v9 = vld [vmem:[#allocation2 + $0x164] ss:$8 sps:$4 sm:$0xff]  }
 0x2e2   :  { %1651 = vmatprep.subr.bf16.mxu0 %v4634_v10  ;;  %v4668_v10 = vld [vmem:[#allocation2 + $0x160] ss:$8 sps:$4 sm:$0xff]  }
 0x2e5   :  { %1652 = vmatpush1.bf16.msra.mxu0 %v4632_v11  ;;  %v4673_v11 = vld [vmem:[#allocation2 + $0x174] ss:$8 sps:$4 sm:$0xff]  }
 0x2e6   :  { %1653 = vmatprep.subr.bf16.mxu0 %v4637_v13  ;;  %v4671_v13 = vld [vmem:[#allocation2 + $0x170] ss:$8 sps:$4 sm:$0xff]  }
 0x2e9   :  { %1654 = vmatpush1.bf16.msra.mxu0 %v4635_v14  ;;  %v4676_v14 = vld [vmem:[#allocation2 + $0x184] ss:$8 sps:$4 sm:$0xff]  }
 0x2ea   :  { %1655 = vmatprep.subr.bf16.mxu0 %v4640_v15  ;;  %v4674_v15 = vld [vmem:[#allocation2 + $0x180] ss:$8 sps:$4 sm:$0xff]  }
 0x2ed   :  { %1656 = vmatpush1.bf16.msra.mxu0 %v4638_v16  ;;  %v4679_v16 = vld [vmem:[#allocation2 + $0x194] ss:$8 sps:$4 sm:$0xff]  }
 0x2ee   :  { %1657 = vmatprep.subr.bf16.mxu0 %v4643_v17  ;;  %v4677_v17 = vld [vmem:[#allocation2 + $0x190] ss:$8 sps:$4 sm:$0xff]  }
 0x2f1   :  { %1658 = vmatpush1.bf16.msra.mxu0 %v4641_v18  ;;  %v4682_v18 = vld [vmem:[#allocation2 + $0x1a4] ss:$8 sps:$4 sm:$0xff]  }
 0x2f2   :  { %1659 = vmatprep.subr.bf16.mxu0 %v4646_v21  ;;  %v4680_v21 = vld [vmem:[#allocation2 + $0x1a0] ss:$8 sps:$4 sm:$0xff]  }
 0x2f5   :  { %1660 = vmatpush1.bf16.msra.mxu0 %v4644_v22  ;;  %v4685_v22 = vld [vmem:[#allocation2 + $0x1b4] ss:$8 sps:$4 sm:$0xff]  }
 0x2f6   :  { %1661 = vmatprep.subr.bf16.mxu0 %v4649_v23  ;;  %v4683_v23 = vld [vmem:[#allocation2 + $0x1b0] ss:$8 sps:$4 sm:$0xff]  }
 0x2f9   :  { %1662 = vmatpush1.bf16.msra.mxu0 %v4647_v25  ;;  %v4688_v25 = vld [vmem:[#allocation2 + $0x1c4] ss:$8 sps:$4 sm:$0xff]  }
 0x2fa   :  { %1672 = vmatprep.subr.bf16.mxu0 %v4652_v27  ;;  %v4686_v27 = vld [vmem:[#allocation2 + $0x1c0] ss:$8 sps:$4 sm:$0xff]  }
 0x38f   :  { %v1139_v33 = vpop.f32.mrb[4].mxu0  ;;  %v5682_v34 = vpop.f32.mrb[12].mxu1 }
 0x390   :  { %v1190_v35 = vrot.slane %v1139_v33, %v5592_v38  ;;  %v1141_v36 = vpop.f32.mrb[5].mxu0  ;;  %v1182_v41 = vpop.f32.mrb[13].mxu1  ;;  %v1210_v49 = vrot.slane %v1139_v33, %v5598_v40  ;;  %v1198_v28 = vrot.slane %v5682_v34, %v5592_v38  ;;  %v1218_v33 = vrot.slane %v5682_v34, %v5598_v40  ;;  %v4704_v34 = vld [vmem:[%s6121_s26 + $0x58] sm:$0xff]  }
 0x391   :  { %v1194_v42 = vrot.slane %v1141_v36, %v5592_v38  ;;  %v1202_v43 = vrot.slane %v1182_v41, %v5592_v38  ;;  %v1143_v45 = vpop.f32.mrb[6].mxu0  ;;  %v1184_v47 = vpop.f32.mrb[14].mxu1  ;;  %v1214_v53 = vrot.slane %v1141_v36, %v5598_v40  ;;  %v1222_v55 = vrot.slane %v1182_v41, %v5598_v40  ;;  %v4697_v41 = vld [vmem:[#allocation2 + $0x1f4] ss:$8 sps:$4 sm:$0xff]  }
 0x392   :  { %v1203_v48 = vmul.f32 %v1190_v35, %v5602_v44  ;;  %v1144_v50 = vpop.f32.mrb[7].mxu0  ;;  %v1185_v51 = vpop.f32.mrb[15].mxu1  ;;  %v4650_v44 = vld [vmem:[#allocation2 + $0x100] ss:$8 sps:$4 sm:$0xff]   ;;  %v1205_v31 = vmul.f32 %v1198_v28, %v5624_v24  ;;  %v4703_v24 = vld [vmem:[%s6121_s26 + $0x10] sm:$0xff]   ;;  %v4705_v47 = vld [vmem:[%s6121_s26 + $0x18] sm:$0xff]  }
 0x393   :  { %v1204_v52 = vmul.f32 %v1194_v42, %v5604_v46  ;;  %v1206_v54 = vmul.f32 %v1202_v43, %v5626_v26  ;;  %v4653_v46 = vld [vmem:[#allocation2 + $0x110] ss:$8 sps:$4 sm:$0xff]   ;;  %v4658_v26 = vld [vmem:[#allocation2 + $0x124] ss:$8 sps:$4 sm:$0xff]   ;;  %v4692_v35 = vld [vmem:[#allocation2 + $0x1e0] ss:$8 sps:$4 sm:$0xff]   ;;  %4363 = vmatpush3.bf16.msra.mxu1 %v4703_v24 }
 0x394   :  { %v1223_v56 = vadd.f32 %v1210_v49, %v1203_v48  ;;  %v1225_v36 = vadd.f32 %v1218_v33, %v1205_v31  ;;  %v4695_v42 = vld [vmem:[#allocation2 + $0x1f0] ss:$8 sps:$4 sm:$0xff]   ;;  %4364 = vmatprep.subr.bf16.mxu1 %v4704_v34  ;;  %v4706_v48 = vld [vmem:[%s6121_s26 + $0x60] sm:$0xff]   ;;  %v4708_v50 = vld [vmem:[%s6121_s26 + $0x68] sm:$0xff]  }
 0x395   :  { %v1224_v57 = vadd.f32 %v1214_v53, %v1204_v52  ;;  %v1226_v58 = vadd.f32 %v1222_v55, %v1206_v54  ;;  %v4707_v49 = vld [vmem:[%s6121_s26 + $0x20] sm:$0xff]   ;;  %v4709_v51 = vld [vmem:[%s6121_s26 + $0x28] sm:$0xff]   ;;  %v4710_v52 = vld [vmem:[%s6121_s26 + $0x70] sm:$0xff]  }
 0x396   :  { %v1227_v59 = vmax.f32 %v1223_v56, 0.0  ;;  %v1229_v43 = vmax.f32 %v1225_v36, 0.0  ;;  %v4711_v53 = vld [vmem:[%s6121_s26 + $0x30] sm:$0xff]   ;;  %v4712_v54 = vld [vmem:[%s6121_s26 + $0x78] sm:$0xff]   ;;  %v1299_v56 = vld [vmem:[%s6122_s1] sm:$0x3] }
 0x397   :  { %v1228_v60 = vmax.f32 %v1224_v57, 0.0  ;;  %v1230_v61 = vmax.f32 %v1226_v58, 0.0  ;;  %4365 = vmatpush3.bf16.msra.mxu1 %v4705_v47  ;;  %v4713_v55 = vld [vmem:[%s6121_s26 + $0x38] sm:$0xff]   ;;  %v1304_v57 = vrot.slane %v1299_v56, %v5592_v38  ;;  %v1308_v58 = vrot.slane %v1299_v56, %v5598_v40  ;;  %s5112_s1 = smov [#allocation9]  }
 0x398   :  { %v1231_v63 = vpack.c.bf16 %v1227_v59, %v1227_v59  ;;  %v1233_v45 = vpack.c.bf16 %v1229_v43, %v1229_v43  ;;  %4366 = vmatprep.subr.bf16.mxu1 %v4706_v48  ;;  %v4714_v43 = vld [vmem:[%s6123_s0] ss:$8 sps:$4 sm:$0xff]   ;;  %s3917_s26 = sshll.u32 %s5112_s1, 4  ;;  %s3918_s26 = int_to_ptr.vmem [resolvable:$true] %s3917_s26 }
 0x399   :  { %v1232_v62 = vpack.c.bf16 %v1228_v60, %v1228_v60  ;;  %v1234_v1 = vpack.c.bf16 %v1230_v61, %v1230_v61 }
 0x39b   :  { %1663 = vmatprep.mubr.bf16.mxu0 %v1232_v62  ;;  %4367 = vmatpush3.bf16.msra.mxu1 %v4707_v49 }
 0x39c   :  { %1664 = vmatmul.mubr.bf16.vlgmr.msra.gmra.mrb[8].mxu0 %v1231_v63  ;;  %4368 = vmatprep.subr.bf16.mxu1 %v4708_v50 }
 0x39d   :  { %1673 = vmatpush1.bf16.msra.mxu0 %v4650_v44  ;;  %1704 = vmatprep.mubr.bf16.mxu0 %v1234_v1 }
 0x39e   :  { %1674 = vmatprep.subr.bf16.mxu0 %v4655_v0 }
 0x39f   :  { %4369 = vmatpush3.bf16.msra.mxu1 %v4709_v51 }
 0x3a0   :  { %4370 = vmatprep.subr.bf16.mxu1 %v4710_v52 }
 0x3a1   :  { %1675 = vmatpush1.bf16.msra.mxu0 %v4653_v46 }
 0x3a2   :  { %1676 = vmatprep.subr.bf16.mxu0 %v4658_v26 }
 0x3a3   :  { %4371 = vmatpush3.bf16.msra.mxu1 %v4711_v53 }
 0x3a4   :  { %4372 = vmatprep.subr.bf16.mxu1 %v4712_v54 }
 0x3a5   :  { %1677 = vmatpush1.bf16.msra.mxu0 %v4656_v2 }
 0x3a6   :  { %1678 = vmatprep.subr.bf16.mxu0 %v4661_v3 }
 0x3a7   :  { %4373 = vmatpush3.bf16.msra.mxu1 %v4713_v55 }
 0x3a9   :  { %1679 = vmatpush1.bf16.msra.mxu0 %v4659_v4 }
 0x3aa   :  { %1680 = vmatprep.subr.bf16.mxu0 %v4664_v5 }
 0x3ad   :  { %1681 = vmatpush1.bf16.msra.mxu0 %v4662_v6 }
 0x3ae   :  { %1682 = vmatprep.subr.bf16.mxu0 %v4667_v7 }
 0x3b1   :  { %1683 = vmatpush1.bf16.msra.mxu0 %v4665_v8 }
 0x3b2   :  { %1684 = vmatprep.subr.bf16.mxu0 %v4670_v9 }
 0x3b5   :  { %1685 = vmatpush1.bf16.msra.mxu0 %v4668_v10 }
 0x3b6   :  { %1686 = vmatprep.subr.bf16.mxu0 %v4673_v11 }
 0x3b9   :  { %1687 = vmatpush1.bf16.msra.mxu0 %v4671_v13 }
 0x3ba   :  { %1688 = vmatprep.subr.bf16.mxu0 %v4676_v14 }
 0x3bd   :  { %1689 = vmatpush1.bf16.msra.mxu0 %v4674_v15 }
 0x3be   :  { %1690 = vmatprep.subr.bf16.mxu0 %v4679_v16 }
 0x3c1   :  { %1691 = vmatpush1.bf16.msra.mxu0 %v4677_v17 }
 0x3c2   :  { %1692 = vmatprep.subr.bf16.mxu0 %v4682_v18 }
 0x3c5   :  { %1693 = vmatpush1.bf16.msra.mxu0 %v4680_v21 }
 0x3c6   :  { %1694 = vmatprep.subr.bf16.mxu0 %v4685_v22 }
 0x3c9   :  { %1695 = vmatpush1.bf16.msra.mxu0 %v4683_v23 }
 0x3ca   :  { %1696 = vmatprep.subr.bf16.mxu0 %v4688_v25 }
 0x3cd   :  { %1697 = vmatpush1.bf16.msra.mxu0 %v4686_v27 }
 0x3ce   :  { %1698 = vmatprep.subr.bf16.mxu0 %v4691_v29 }
 0x3d1   :  { %1699 = vmatpush1.bf16.msra.mxu0 %v4689_v30 }
 0x3d2   :  { %1700 = vmatprep.subr.bf16.mxu0 %v4694_v32 }
 0x3d5   :  { %1701 = vmatpush1.bf16.msra.mxu0 %v4692_v35 }
 0x3d6   :  { %1702 = vmatprep.subr.bf16.mxu0 %v4697_v41 }
 0x3d9   :  { %1703 = vmatpush1.bf16.msra.mxu0 %v4695_v42  ;;  %v4716_v42 = vld [vmem:[%s6123_s0 + $0x4] ss:$8 sps:$4 sm:$0xff]  }
 0x3da   :  { %1969 = vmatprep.subr.bf16.mxu1 %v4716_v42 }
 0x3dc   :  { %1705 = vmatmul.mubr.bf16.vlgmr.msra.gmra.mrb[8].mxu0 %v1233_v45  ;;  %v4717_v45 = vld [vmem:[%s6078_s14 + $0x40] sm:$0xff]  }
 0x4af   :  { %v1706_v59 = vpop.f32.mrb[8].mxu0 }
 0x4b0   :  { %v5736_v60 = vadd.f32 %v1706_v59, %v1304_v57  ;;  %v1708_v61 = vpop.f32.mrb[9].mxu0 }
 0x4b1   :  { %v5738_v62 = vadd.f32 %v1708_v61, %v1308_v58  ;;  %v1710_v44 = vpop.f32.mrb[10].mxu0  ;;  %v1921_v58 = vld [vmem:[%s6124_s2] sm:$0x1] }
 0x4b2   :  { %v1713_v63 = vsel %vm632_vm0, %v5736_v60, 0.0  ;;  %v1727_v0 = vmul.f32 %v5736_v60, %v5736_v60  ;;  %v1711_v1 = vpop.f32.mrb[11].mxu0  ;;  %v1942_v44 = vld [vmem:[%s6077_s13] sm:$0x1] }
 0x4b3   :  { %v1714_v46 = vrot.slane %v1713_v63, 4  ;;  %v1720_v26 = vsel %vm632_vm0, %v5738_v62, 0.0  ;;  %v1728_v2 = vmul.f32 %v5738_v62, %v5738_v62 }
 0x4b4   :  { %v1729_v3 = vsel %vm632_vm0, %v1727_v0, 0.0  ;;  %v1721_v4 = vrot.slane %v1720_v26, 4 }
 0x4b5   :  { %v1715_v5 = vadd.f32 %v1714_v46, %v1713_v63  ;;  %v1730_v6 = vrot.slane %v1729_v3, 4  ;;  %v1736_v7 = vsel %vm632_vm0, %v1728_v2, 0.0 }
 0x4b6   :  { %v1722_v8 = vadd.f32 %v1721_v4, %v1720_v26  ;;  %v1737_v9 = vrot.slane %v1736_v7, 4  ;;  %v4718_v26 = vld [vmem:[%s6078_s14] sm:$0xff]   ;;  %v4720_v4 = vld [vmem:[%s6078_s14 + $0x8] sm:$0xff]  }
 0x4b7   :  { %v1716_v10 = vrot.slane %v1715_v5, 2  ;;  %v1731_v11 = vadd.f32 %v1730_v6, %v1729_v3  ;;  %v4719_v3 = vld [vmem:[%s6078_s14 + $0x48] sm:$0xff]   ;;  %v4722_v6 = vld [vmem:[%s6078_s14 + $0x10] sm:$0xff]  }
 0x4b8   :  { %v1723_v13 = vrot.slane %v1722_v8, 2  ;;  %v1738_v14 = vadd.f32 %v1737_v9, %v1736_v7  ;;  %v4723_v7 = vld [vmem:[%s6078_s14 + $0x58] sm:$0xff]   ;;  %v4725_v9 = vld [vmem:[%s6078_s14 + $0x60] sm:$0xff]  }
 0x4b9   :  { %v1717_v15 = vadd.f32 %v1716_v10, %v1715_v5  ;;  %v1732_v16 = vrot.slane %v1731_v11, 2  ;;  %v4721_v5 = vld [vmem:[%s6078_s14 + $0x50] sm:$0xff]   ;;  %v4726_v10 = vld [vmem:[%s6078_s14 + $0x20] sm:$0xff]  }
 0x4ba   :  { %v1724_v17 = vadd.f32 %v1723_v13, %v1722_v8  ;;  %v1739_v18 = vrot.slane %v1738_v14, 2  ;;  %v4724_v8 = vld [vmem:[%s6078_s14 + $0x18] sm:$0xff]   ;;  %v4728_v13 = vld [vmem:[%s6078_s14 + $0x28] sm:$0xff]  }
 0x4bb   :  { %v1718_v21 = vrot.slane %v1717_v15, 1  ;;  %v1733_v22 = vadd.f32 %v1732_v16, %v1731_v11  ;;  %v4727_v11 = vld [vmem:[%s6078_s14 + $0x68] sm:$0xff]   ;;  %v4731_v16 = vld [vmem:[%s6078_s14 + $0x78] sm:$0xff]  }
 0x4bc   :  { %v1725_v23 = vrot.slane %v1724_v17, 1  ;;  %v1740_v25 = vadd.f32 %v1739_v18, %v1738_v14  ;;  %v4729_v14 = vld [vmem:[%s6078_s14 + $0x70] sm:$0xff]  }
 0x4bd   :  { %v1734_v27 = vrot.slane %v1733_v22, 1  ;;  %v1719_v29 = vadd.f32 %v1718_v21, %v1717_v15  ;;  %v4730_v15 = vld [vmem:[%s6078_s14 + $0x30] sm:$0xff]  }
 0x4be   :  { %v1741_v28 = vrot.slane %v1740_v25, 1  ;;  %v1726_v31 = vadd.f32 %v1725_v23, %v1724_v17  ;;  %v4732_v17 = vld [vmem:[%s6078_s14 + $0x38] sm:$0xff]  }
 0x4bf   :  { %v1735_v30 = vadd.f32 %v1734_v27, %v1733_v22 }
 0x4c0   :  { %v1742_v32 = vadd.f32 %v1741_v28, %v1740_v25 }
 0x4c1   :  { %v1743_v33 = vsel %vm693_vm1, %v1719_v29, %v1735_v30 }
 0x4c2   :  { %v1744_v35 = vsel %vm693_vm1, %v1726_v31, %v1742_v32  ;;  %v1745_v41 = vpack.c.bf16 %v1743_v33, %v1743_v33 }
 0x4c3   :  { %v1746_v36 = vpack.c.bf16 %v1744_v35, %v1744_v35 }
 0x4c5   :  { %1907 = vmatprep.mubr.bf16.mxu1 %v1746_v36 }
 0x4c6   :  { %1908 = vmatmul.mubr.bf16.vlgmr.msra.gmra.mrb[16].mxu1 %v1745_v41 }
 0x4c7   :  { %2001 = vmatprep.mubr.bf16.mxu1 %v5108_v12  ;;  %1970 = vmatpush1.bf16.msra.mxu1 %v4714_v43 }
 0x4c8   :  { %4380 = vmatprep.subr.bf16.mxu1 %v4717_v45  ;;  %v4121_v45 = vld [vmem:[%s6079_s15] ss:$0 sm:$0xff]  ;;  %s5110_s15 = smov 96  }
 0x599   :  { %v4374_v24 = vpop.f32.mrb[16].mxu1 }
 0x59a   :  { %v4375_v34 = vpop.f32.mrb[17].mxu1 }
 0x59b   :  { %v4376_v47 = vadd.f32 %v4375_v34, %v4374_v24  ;;  %v4377_v48 = vpop.f32.mrb[18].mxu1 }
 0x59c   :  { %v4378_v49 = vpop.f32.mrb[19].mxu1 }
 0x59d   :  { %v1915_v50 = vmul.f32 0.03125, %v4376_v47 }
 0x59f   :  { %v1916_v51 = vmul.f32 %v1915_v50, %v1915_v50 }
 0x5a1   :  { %v1918_v52 = vrot.slane %v1916_v51, 7 }
 0x5a3   :  { %v1920_v53 = vsub.f32 %v1915_v50, %v1918_v52  ;;  %v4738_v52 = vld [vmem:[%s6080_s16 + $0x14] ss:$8 sps:$4 sm:$0xff]  }
 0x5a5   :  { %v1922_v54 = vadd.f32 1e-05, %v1920_v53  ;;  %v4736_v53 = vld [vmem:[%s6080_s16 + $0x10] ss:$8 sps:$4 sm:$0xff]  }
 0x5a7   :  { %4969 = vrsqrt.f32 %v1922_v54  ;;  %v4741_v54 = vld [vmem:[#allocation5 + $0x4] ss:$16 sps:$4 sm:$0xff]  }
 0x5b1   :  { %v4970_v55 = vpop.eup %4969 }
 0x5b2   :  { %v1931_v56 = vrot.slane %v4970_v55, %v5653_v39  ;;  %v4742_v55 = vld [vmem:[#allocation5 + $0x8] ss:$16 sps:$4 sm:$0xff]  }
 0x5b4   :  { %v1932_v57 = vcombine.high %v1931_v56, %v1931_v56  ;;  %v4744_v56 = vld [vmem:[#allocation5 + $0xc] ss:$16 sps:$4 sm:$0xff]  }
 0x5b5   :  { %2750 = vmatprep.subr.bf16.mxu0 %v4744_v56  ;;  %v4807_v56 = vld [vmem:[#allocation5 + $0x164] ss:$16 sps:$4 sm:$0xff]  }
 0x5b6   :  { %v1939_v59 = vrot.slane %v1932_v57, %v5653_v39  ;;  %v4750_v57 = vld [vmem:[#allocation5 + $0x2c] ss:$16 sps:$4 sm:$0xff]   ;;  %2751 = vmatpush1.bf16.msra.mxu0 %v4742_v55  ;;  %v4799_v55 = vld [vmem:[#allocation5 + $0x140] ss:$16 sps:$4 sm:$0xff]  }
 0x5b7   :  { %2752 = vmatprep.subr.bf16.mxu0 %v4750_v57  ;;  %v4805_v57 = vld [vmem:[#allocation5 + $0x160] ss:$16 sps:$4 sm:$0xff]  }
 0x5b8   :  { %v1941_v61 = vmul.f32 %v1939_v59, %v1921_v58  ;;  %v4748_v58 = vld [vmem:[#allocation5 + $0x28] ss:$16 sps:$4 sm:$0xff]  }
 0x5ba   :  { %v1943_v63 = vmul.f32 %v1941_v61, %v1915_v50  ;;  %2753 = vmatpush1.bf16.msra.mxu0 %v4748_v58  ;;  %v4813_v58 = vld [vmem:[#allocation5 + $0x184] ss:$16 sps:$4 sm:$0xff]  }
 0x5bc   :  { %v1944_v0 = vsub.f32 %v1942_v44, %v1943_v63  ;;  %v4754_v44 = vld [vmem:[#allocation5 + $0x48] ss:$16 sps:$4 sm:$0xff]   ;;  %v4762_v63 = vld [vmem:[#allocation5 + $0x6c] ss:$16 sps:$4 sm:$0xff]  }
 0x5be   :  { %v1949_v1 = vrot.slane %v1944_v0, %v5592_v38  ;;  %v4760_v0 = vld [vmem:[#allocation5 + $0x68] ss:$16 sps:$4 sm:$0xff]  }
 0x5c0   :  { %v1951_v46 = vsel %vm693_vm1, %v1941_v61, %v1949_v1  ;;  %v4756_v61 = vld [vmem:[#allocation5 + $0x4c] ss:$16 sps:$4 sm:$0xff]  }
 0x5c1   :  { %v1952_v2 = vpack.c.bf16 %v1951_v46, %v1951_v46  ;;  %2754 = vmatprep.subr.bf16.mxu0 %v4756_v61  ;;  %v4768_v1 = vld [vmem:[#allocation5 + $0x8c] ss:$16 sps:$4 sm:$0xff]   ;;  %v4766_v46 = vld [vmem:[#allocation5 + $0x88] ss:$16 sps:$4 sm:$0xff]   ;;  %v4819_v61 = vld [vmem:[#allocation5 + $0x1a4] ss:$16 sps:$4 sm:$0xff]  }
 0x5c2   :  { %2755 = vmatpush1.bf16.msra.mxu0 %v4754_v44  ;;  %v4817_v44 = vld [vmem:[#allocation5 + $0x1a0] ss:$16 sps:$4 sm:$0xff]  }
 0x5c3   :  { %4120 = vmatmul.mubr.msk.bf16.vlgmr.msra.gmra.mrb[20].mxu1 %vm1965_vm4, %v1952_v2  ;;  %2756 = vmatprep.subr.bf16.mxu0 %v4762_v63  ;;  %v4772_v2 = vld [vmem:[#allocation5 + $0xa8] ss:$16 sps:$4 sm:$0xff]   ;;  %v4825_v63 = vld [vmem:[#allocation5 + $0x1c4] ss:$16 sps:$4 sm:$0xff]  }
 0x5c4   :  { %4381 = vmatpush3.bf16.msra.mxu1 %v4718_v26  ;;  %v4774_v26 = vld [vmem:[#allocation5 + $0xac] ss:$16 sps:$4 sm:$0xff]  }
 0x5c5   :  { %4382 = vmatprep.subr.bf16.mxu1 %v4719_v3  ;;  %v4780_v3 = vld [vmem:[#allocation5 + $0xcc] ss:$16 sps:$4 sm:$0xff]  }
 0x5c6   :  { %2757 = vmatpush1.bf16.msra.mxu0 %v4760_v0  ;;  %v4823_v0 = vld [vmem:[#allocation5 + $0x1c0] ss:$16 sps:$4 sm:$0xff]  }
 0x5c7   :  { %2758 = vmatprep.subr.bf16.mxu0 %v4768_v1  ;;  %v4831_v1 = vld [vmem:[#allocation5 + $0x1e4] ss:$16 sps:$4 sm:$0xff]  }
 0x5c8   :  { %4383 = vmatpush3.bf16.msra.mxu1 %v4720_v4  ;;  %v4778_v4 = vld [vmem:[#allocation5 + $0xc8] ss:$16 sps:$4 sm:$0xff]  }
 0x5c9   :  { %4384 = vmatprep.subr.bf16.mxu1 %v4721_v5  ;;  %v4786_v5 = vld [vmem:[#allocation5 + $0xec] ss:$16 sps:$4 sm:$0xff]  }
 0x5ca   :  { %2759 = vmatpush1.bf16.msra.mxu0 %v4766_v46  ;;  %v4834_v46 = vld [vmem:[#allocation5 + $0x1ec] ss:$16 sps:$4 sm:$0xff]  }
 0x5cb   :  { %2760 = vmatprep.subr.bf16.mxu0 %v4774_v26  ;;  %v4829_v26 = vld [vmem:[#allocation5 + $0x1e0] ss:$16 sps:$4 sm:$0xff]  }
 0x5cc   :  { %4385 = vmatpush3.bf16.msra.mxu1 %v4722_v6  ;;  %v4784_v6 = vld [vmem:[#allocation5 + $0xe8] ss:$16 sps:$4 sm:$0xff]  }
 0x5cd   :  { %4386 = vmatprep.subr.bf16.mxu1 %v4723_v7  ;;  %v4792_v7 = vld [vmem:[#allocation5 + $0x10c] ss:$16 sps:$4 sm:$0xff]  }
 0x5ce   :  { %2761 = vmatpush1.bf16.msra.mxu0 %v4772_v2  ;;  %v4832_v2 = vld [vmem:[#allocation5 + $0x1e8] ss:$16 sps:$4 sm:$0xff]  }
 0x5cf   :  { %2762 = vmatprep.subr.bf16.mxu0 %v4780_v3  ;;  %v4835_v3 = vld [vmem:[%s6084_s20 + $0x40] sm:$0xff]  }
 0x5d0   :  { %4387 = vmatpush3.bf16.msra.mxu1 %v4724_v8  ;;  %v4790_v8 = vld [vmem:[#allocation5 + $0x108] ss:$16 sps:$4 sm:$0xff]  }
 0x5d1   :  { %4388 = vmatprep.subr.bf16.mxu1 %v4725_v9  ;;  %v4798_v9 = vld [vmem:[#allocation5 + $0x12c] ss:$16 sps:$4 sm:$0xff]  }
 0x5d2   :  { %2763 = vmatpush1.bf16.msra.mxu0 %v4778_v4  ;;  %v2224_v4 = vld [vmem:[%s6081_s17] sm:$0x3] }
 0x5d3   :  { %2764 = vmatprep.subr.bf16.mxu0 %v4786_v5  ;;  %v2229_v5 = vrot.slane %v2224_v4, %v5592_v38 }
 0x5d4   :  { %4389 = vmatpush3.bf16.msra.mxu1 %v4726_v10  ;;  %v4796_v10 = vld [vmem:[#allocation5 + $0x128] ss:$16 sps:$4 sm:$0xff]  }
 0x5d5   :  { %4390 = vmatprep.subr.bf16.mxu1 %v4727_v11  ;;  %v4804_v11 = vld [vmem:[#allocation5 + $0x14c] ss:$16 sps:$4 sm:$0xff]  }
 0x5d6   :  { %2765 = vmatpush1.bf16.msra.mxu0 %v4784_v6  ;;  %v2233_v6 = vrot.slane %v2224_v4, %v5598_v40 }
 0x5d7   :  { %2766 = vmatprep.subr.bf16.mxu0 %v4792_v7 }
 0x5d8   :  { %4391 = vmatpush3.bf16.msra.mxu1 %v4728_v13  ;;  %v4802_v13 = vld [vmem:[#allocation5 + $0x148] ss:$16 sps:$4 sm:$0xff]  }
 0x5d9   :  { %4392 = vmatprep.subr.bf16.mxu1 %v4729_v14  ;;  %v4810_v14 = vld [vmem:[#allocation5 + $0x16c] ss:$16 sps:$4 sm:$0xff]  }
 0x5da   :  { %2767 = vmatpush1.bf16.msra.mxu0 %v4790_v8 }
 0x5db   :  { %2768 = vmatprep.subr.bf16.mxu0 %v4798_v9 }
 0x5dc   :  { %4393 = vmatpush3.bf16.msra.mxu1 %v4730_v15  ;;  %v4808_v15 = vld [vmem:[#allocation5 + $0x168] ss:$16 sps:$4 sm:$0xff]  }
 0x5dd   :  { %4394 = vmatprep.subr.bf16.mxu1 %v4731_v16  ;;  %v4816_v16 = vld [vmem:[#allocation5 + $0x18c] ss:$16 sps:$4 sm:$0xff]  }
 0x5de   :  { %2769 = vmatpush1.bf16.msra.mxu0 %v4796_v10 }
 0x5df   :  { %2770 = vmatprep.subr.bf16.mxu0 %v4804_v11 }
 0x5e0   :  { %4395 = vmatpush3.bf16.msra.mxu1 %v4732_v17  ;;  %v4814_v17 = vld [vmem:[#allocation5 + $0x188] ss:$16 sps:$4 sm:$0xff]  }
 0x5e2   :  { %2771 = vmatpush1.bf16.msra.mxu0 %v4802_v13 }
 0x5e3   :  { %2772 = vmatprep.subr.bf16.mxu0 %v4810_v14 }
 0x5e6   :  { %2773 = vmatpush1.bf16.msra.mxu0 %v4808_v15  ;;  %v4836_v15 = vld [vmem:[%s6084_s20] sm:$0xff]  }
 0x5e7   :  { %2774 = vmatprep.subr.bf16.mxu0 %v4816_v16 }
 0x5ea   :  { %2775 = vmatpush1.bf16.msra.mxu0 %v4814_v17  ;;  %v4837_v17 = vld [vmem:[%s6084_s20 + $0x48] sm:$0xff]  }
 0x696   :  { %v2003_v18 = vpop.f32.mrb[20].mxu1 }
 0x697   :  { %v2013_v21 = vrot.slane %v2003_v18, %v5592_v38  ;;  %v2005_v22 = vpop.f32.mrb[21].mxu1  ;;  %v2023_v28 = vrot.slane %v2003_v18, %v5598_v40  ;;  %v4822_v18 = vld [vmem:[#allocation5 + $0x1ac] ss:$16 sps:$4 sm:$0xff]  }
 0x698   :  { %v2017_v23 = vrot.slane %v2005_v22, %v5592_v38  ;;  %v2007_v25 = vpop.f32.mrb[22].mxu1  ;;  %v2027_v31 = vrot.slane %v2005_v22, %v5598_v40  ;;  %2776 = vmatprep.subr.bf16.mxu0 %v4822_v18  ;;  %v4828_v22 = vld [vmem:[#allocation5 + $0x1cc] ss:$16 sps:$4 sm:$0xff]  }
 0x699   :  { %v2018_v27 = vmul.f32 %v5736_v60, %v2013_v21  ;;  %v2008_v29 = vpop.f32.mrb[23].mxu1  ;;  %v4733_v60 = vld [vmem:[%s6080_s16] ss:$8 sps:$4 sm:$0xff]  }
 0x69a   :  { %v2019_v30 = vmul.f32 %v5738_v62, %v2017_v23  ;;  %v4735_v62 = vld [vmem:[%s6080_s16 + $0x4] ss:$8 sps:$4 sm:$0xff]   ;;  %v4820_v21 = vld [vmem:[#allocation5 + $0x1a8] ss:$16 sps:$4 sm:$0xff]   ;;  %v2209_v25 = vld [vmem:[%s6125_s24] sm:$0x3] }
 0x69b   :  { %v2028_v32 = vadd.f32 %v2023_v28, %v2018_v27  ;;  %2260 = vmatprep.subr.bf16.mxu1 %v4735_v62  ;;  %2777 = vmatpush1.bf16.msra.mxu0 %v4820_v21  ;;  %v4826_v23 = vld [vmem:[#allocation5 + $0x1c8] ss:$16 sps:$4 sm:$0xff]   ;;  %v4765_v62 = vld [vmem:[#allocation5 + $0x84] ss:$16 sps:$4 sm:$0xff]  }
 0x69c   :  { %v2029_v33 = vadd.f32 %v2027_v31, %v2019_v30  ;;  %2778 = vmatprep.subr.bf16.mxu0 %v4828_v22  ;;  %v4739_v31 = vld [vmem:[#allocation5] ss:$16 sps:$4 sm:$0xff]   ;;  %v4838_v18 = vld [vmem:[%s6084_s20 + $0x8] sm:$0xff]  }
 0x69d   :  { %v2030_v35 = vmax.f32 %v2028_v32, 0.0  ;;  %v4839_v21 = vld [vmem:[%s6084_s20 + $0x50] sm:$0xff]  }
 0x69e   :  { %v2031_v36 = vmax.f32 %v2029_v33, 0.0  ;;  %v4747_v33 = vld [vmem:[#allocation5 + $0x24] ss:$16 sps:$4 sm:$0xff]  }
 0x69f   :  { %v2032_v42 = vpack.c.bf16 %v2030_v35, %v2030_v35  ;;  %2779 = vmatpush1.bf16.msra.mxu0 %v4826_v23  ;;  %v4745_v35 = vld [vmem:[#allocation5 + $0x20] ss:$16 sps:$4 sm:$0xff]   ;;  %v4841_v23 = vld [vmem:[%s6084_s20 + $0x58] sm:$0xff]  }
 0x6a0   :  { %v2033_v41 = vpack.c.bf16 %v2031_v36, %v2031_v36  ;;  %v4753_v36 = vld [vmem:[#allocation5 + $0x44] ss:$16 sps:$4 sm:$0xff]   ;;  %2780 = vmatprep.subr.bf16.mxu0 %v4834_v46 }
 0x6a1   :  { %v4840_v22 = vld [vmem:[%s6084_s20 + $0x10] sm:$0xff]  }
 0x6a2   :  { %2201 = vmatprep.mubr.bf16.mxu1 %v2033_v41  ;;  %v4751_v41 = vld [vmem:[#allocation5 + $0x40] ss:$16 sps:$4 sm:$0xff]  }
 0x6a3   :  { %2202 = vmatmul.mubr.bf16.vlgmr.msra.gmra.mrb[24].mxu1 %v2032_v42  ;;  %v4759_v42 = vld [vmem:[#allocation5 + $0x64] ss:$16 sps:$4 sm:$0xff]   ;;  %2781 = vmatpush1.bf16.msra.mxu0 %v4832_v2 }
 0x6a4   :  { %2292 = vmatprep.mubr.bf16.mxu1 %v5108_v12  ;;  %2261 = vmatpush1.bf16.msra.mxu1 %v4733_v60  ;;  %v4757_v60 = vld [vmem:[#allocation5 + $0x60] ss:$16 sps:$4 sm:$0xff]  }
 0x6a5   :  { %2262 = vmatprep.subr.bf16.mxu1 %v4738_v52  ;;  %v4795_v52 = vld [vmem:[#allocation5 + $0x124] ss:$16 sps:$4 sm:$0xff]  }
 0x6a8   :  { %2263 = vmatpush1.bf16.msra.mxu1 %v4736_v53  ;;  %v4793_v53 = vld [vmem:[#allocation5 + $0x120] ss:$16 sps:$4 sm:$0xff]  }
 0x6a9   :  { %2709 = vmatprep.subr.bf16.mxu1 %v4741_v54  ;;  %v4801_v54 = vld [vmem:[#allocation5 + $0x144] ss:$16 sps:$4 sm:$0xff]  }
 0x776   :  { %v4396_v43 = vpop.f32.mrb[24].mxu1 }
 0x777   :  { %v4397_v24 = vpop.f32.mrb[25].mxu1 }
 0x778   :  { %v4398_v34 = vadd.f32 %v4397_v24, %v4396_v43  ;;  %v4399_v47 = vpop.f32.mrb[26].mxu1  ;;  %v4763_v43 = vld [vmem:[#allocation5 + $0x80] ss:$16 sps:$4 sm:$0xff]  }
 0x779   :  { %v4400_v48 = vpop.f32.mrb[27].mxu1  ;;  %v4769_v24 = vld [vmem:[#allocation5 + $0xa0] ss:$16 sps:$4 sm:$0xff]  }
 0x77a   :  { %v5833_v49 = vadd.f32 %v4398_v34, %v4121_v45  ;;  %v4771_v45 = vld [vmem:[#allocation5 + $0xa4] ss:$16 sps:$4 sm:$0xff]   ;;  %v4775_v47 = vld [vmem:[#allocation5 + $0xc0] ss:$16 sps:$4 sm:$0xff]  }
 0x77b   :  { %v4777_v34 = vld [vmem:[#allocation5 + $0xc4] ss:$16 sps:$4 sm:$0xff]  }
 0x77c   :  { %v2210_v50 = vmul.f32 0.5, %v5833_v49  ;;  %3893 = vst.msk [vmem:[#allocation8] sm:$0x3] %vm3892_vm5, %v5833_v49  ;;  %v4783_v48 = vld [vmem:[#allocation5 + $0xe4] ss:$16 sps:$4 sm:$0xff]  }
 0x77e   :  { %v2211_v51 = vmul.f32 1.442695, %v2210_v50  ;;  %v4789_v50 = vld [vmem:[#allocation5 + $0x104] ss:$16 sps:$4 sm:$0xff]  }
 0x780   :  { %4971 = vpow2.f32 %v2211_v51  ;;  %v4787_v51 = vld [vmem:[#allocation5 + $0x100] ss:$16 sps:$4 sm:$0xff]  }
 0x78a   :  { %v4972_v59 = vpop.eup %4971 }
 0x78b   :  { %2214 = vrot.lane.b32.xlu0 %v4972_v59, %s5110_s15  ;;  %v4811_v59 = vld [vmem:[#allocation5 + $0x180] ss:$16 sps:$4 sm:$0xff]  }
 0x78f   :  { %3895 = vrot.lane.b32.xlu0 %v5833_v49, %s5110_s15 }
 0x7fd   :  { %v2215_v27 = vpop.permute.xlu0 %2214 }
 0x7fe   :  { %v2217_v28 = vmul.f32 %v2215_v27, %v2209_v25  ;;  %v4842_v25 = vld [vmem:[%s6084_s20 + $0x18] sm:$0xff]   ;;  %v4843_v27 = vld [vmem:[%s6084_s20 + $0x60] sm:$0xff]  }
 0x800   :  { %v2218_v29 = vadd.f32 %v2217_v28, %v5833_v49  ;;  %v4781_v49 = vld [vmem:[#allocation5 + $0xe0] ss:$16 sps:$4 sm:$0xff]  }
 0x801   :  { %v3896_v30 = vpop.permute.xlu0 %3895  ;;  %v4844_v28 = vld [vmem:[%s6084_s20 + $0x20] sm:$0xff]  }
 0x802   :  { %v2219_v32 = vpack.c.bf16 %v2218_v29, %v2218_v29  ;;  %3898 = vst.msk [vmem:[#allocation9] sm:$0x3] %vm3892_vm5, %v3896_v30  ;;  %v4845_v29 = vld [vmem:[%s6084_s20 + $0x68] sm:$0xff]  }
 0x803   :  { %v4846_v30 = vld [vmem:[%s6084_s20 + $0x28] sm:$0xff]  }
 0x804   :  { %4142 = vmatmul.mubr.msk.bf16.vlgmr.msra.gmra.mrb[28].mxu1 %vm2256_vm6, %v2219_v32  ;;  %v4848_v32 = vld [vmem:[%s6084_s20 + $0x30] sm:$0xff]  }
 0x805   :  { %2710 = vmatpush1.bf16.msra.mxu1 %v4739_v31  ;;  %v4847_v31 = vld [vmem:[%s6084_s20 + $0x70] sm:$0xff]  }
 0x806   :  { %2711 = vmatprep.subr.bf16.mxu1 %v4747_v33  ;;  %v4849_v33 = vld [vmem:[%s6084_s20 + $0x78] sm:$0xff]  }
 0x809   :  { %2712 = vmatpush1.bf16.msra.mxu1 %v4745_v35  ;;  %v4850_v35 = vld [vmem:[%s6084_s20 + $0x38] sm:$0xff]  }
 0x80a   :  { %2713 = vmatprep.subr.bf16.mxu1 %v4753_v36  ;;  %v4851_v36 = vld [vmem:[%s6084_s20 + $0xc0] sm:$0xff]  }
 0x80d   :  { %2714 = vmatpush1.bf16.msra.mxu1 %v4751_v41  ;;  %v2367_v41 = vld [vmem:[%s6083_s19] sm:$0xf] }
 0x80e   :  { %2715 = vmatprep.subr.bf16.mxu1 %v4759_v42  ;;  %v2372_v42 = vrot.slane %v2367_v41, %v5592_v38 }
 0x811   :  { %2716 = vmatpush1.bf16.msra.mxu1 %v4757_v60  ;;  %v2376_v60 = vrot.slane %v2367_v41, %v5598_v40 }
 0x812   :  { %2717 = vmatprep.subr.bf16.mxu1 %v4765_v62  ;;  %v2384_v62 = vrot.slane %v2367_v41, %v224_v20 }
 0x815   :  { %2718 = vmatpush1.bf16.msra.mxu1 %v4763_v43 }
 0x816   :  { %2719 = vmatprep.subr.bf16.mxu1 %v4771_v45 }
 0x819   :  { %2720 = vmatpush1.bf16.msra.mxu1 %v4769_v24 }
 0x81a   :  { %2721 = vmatprep.subr.bf16.mxu1 %v4777_v34 }
 0x81d   :  { %2722 = vmatpush1.bf16.msra.mxu1 %v4775_v47 }
 0x81e   :  { %2723 = vmatprep.subr.bf16.mxu1 %v4783_v48 }
 0x821   :  { %2724 = vmatpush1.bf16.msra.mxu1 %v4781_v49 }
 0x822   :  { %2725 = vmatprep.subr.bf16.mxu1 %v4789_v50 }
 0x825   :  { %2726 = vmatpush1.bf16.msra.mxu1 %v4787_v51 }
 0x826   :  { %2727 = vmatprep.subr.bf16.mxu1 %v4795_v52 }
 0x829   :  { %2728 = vmatpush1.bf16.msra.mxu1 %v4793_v53 }
 0x82a   :  { %2729 = vmatprep.subr.bf16.mxu1 %v4801_v54 }
 0x82d   :  { %2730 = vmatpush1.bf16.msra.mxu1 %v4799_v55 }
 0x82e   :  { %2731 = vmatprep.subr.bf16.mxu1 %v4807_v56 }
 0x831   :  { %2732 = vmatpush1.bf16.msra.mxu1 %v4805_v57 }
 0x832   :  { %2733 = vmatprep.subr.bf16.mxu1 %v4813_v58 }
 0x835   :  { %2734 = vmatpush1.bf16.msra.mxu1 %v4811_v59 }
 0x836   :  { %2735 = vmatprep.subr.bf16.mxu1 %v4819_v61 }
 0x839   :  { %2736 = vmatpush1.bf16.msra.mxu1 %v4817_v44 }
 0x83a   :  { %2737 = vmatprep.subr.bf16.mxu1 %v4825_v63 }
 0x83d   :  { %2738 = vmatpush1.bf16.msra.mxu1 %v4823_v0 }
 0x83e   :  { %2739 = vmatprep.subr.bf16.mxu1 %v4831_v1 }
 0x841   :  { %2740 = vmatpush1.bf16.msra.mxu1 %v4829_v26 }
 0x842   :  { %4402 = vmatprep.subr.bf16.mxu1 %v4835_v3 }
 0x8d7   :  { %v2294_v7 = vpop.f32.mrb[28].mxu1 }
 0x8d8   :  { %v2295_v8 = vadd.f32 %v2294_v7, %v2229_v5  ;;  %v2296_v9 = vpop.f32.mrb[29].mxu1 }
 0x8d9   :  { %v2297_v10 = vadd.f32 %v2296_v9, %v2233_v6  ;;  %v2298_v11 = vpop.f32.mrb[30].mxu1 }
 0x8da   :  { %v2299_v13 = vpop.f32.mrb[31].mxu1  ;;  %v2301_v16 = vpack.c.bf16 %v2295_v8, %v2295_v8 }
 0x8db   :  { %v2302_v14 = vpack.c.bf16 %v2297_v10, %v2297_v10 }
 0x8dd   :  { %2741 = vmatprep.mubr.bf16.mxu1 %v2302_v14  ;;  %2782 = vmatprep.mubr.bf16.mxu0 %v2302_v14 }
 0x8de   :  { %2742 = vmatmul.mubr.bf16.vlgmr.msra.gmra.mrb[32].mxu1 %v2301_v16  ;;  %2783 = vmatmul.mubr.bf16.vlgmr.msra.gmra.mrb[12].mxu0 %v2301_v16  ;;  %v2380_v16 = vrot.slane %v2367_v41, %v220_v19 }
 0x8df   :  { %4403 = vmatpush3.bf16.msra.mxu1 %v4836_v15  ;;  %3292 = vmatprep.mubr.bf16.mxu0 %v5108_v12 }
 0x8e0   :  { %4404 = vmatprep.subr.bf16.mxu1 %v4837_v17 }
 0x8e3   :  { %4405 = vmatpush3.bf16.msra.mxu1 %v4838_v18 }
 0x8e4   :  { %4406 = vmatprep.subr.bf16.mxu1 %v4839_v21 }
 0x8e7   :  { %4407 = vmatpush3.bf16.msra.mxu1 %v4840_v22 }
 0x8e8   :  { %4408 = vmatprep.subr.bf16.mxu1 %v4841_v23 }
 0x8eb   :  { %4409 = vmatpush3.bf16.msra.mxu1 %v4842_v25 }
 0x8ec   :  { %4410 = vmatprep.subr.bf16.mxu1 %v4843_v27 }
 0x8ef   :  { %4411 = vmatpush3.bf16.msra.mxu1 %v4844_v28 }
 0x8f0   :  { %4412 = vmatprep.subr.bf16.mxu1 %v4845_v29 }
 0x8f3   :  { %4413 = vmatpush3.bf16.msra.mxu1 %v4846_v30 }
 0x8f4   :  { %4414 = vmatprep.subr.bf16.mxu1 %v4847_v31 }
 0x8f7   :  { %4415 = vmatpush3.bf16.msra.mxu1 %v4848_v32 }
 0x8f8   :  { %4416 = vmatprep.subr.bf16.mxu1 %v4849_v33 }
 0x8fb   :  { %4417 = vmatpush3.bf16.msra.mxu1 %v4850_v35 }
 0x8fc   :  { %4424 = vmatprep.subr.bf16.mxu1 %v4851_v36 }
 0x9b1   :  { %v2743_v43 = vpop.f32.mrb[32].mxu1  ;;  %v2784_v45 = vpop.f32.mrb[12].mxu0 }
 0x9b2   :  { %v5914_v24 = vadd.f32 %v2743_v43, %v2372_v42  ;;  %v2745_v34 = vpop.f32.mrb[33].mxu1  ;;  %v2786_v47 = vpop.f32.mrb[13].mxu0  ;;  %v5937_v30 = vadd.f32 %v2784_v45, %v2380_v16  ;;  %v4852_v45 = vld [vmem:[%s6084_s20 + $0x80] sm:$0xff]  }
 0x9b3   :  { %v5916_v48 = vadd.f32 %v2745_v34, %v2376_v60  ;;  %v5918_v49 = vadd.f32 %v2786_v47, %v2384_v62  ;;  %v2747_v50 = vpop.f32.mrb[34].mxu1  ;;  %v2788_v51 = vpop.f32.mrb[14].mxu0 }
 0x9b4   :  { %v2791_v52 = vsel %vm632_vm0, %v5914_v24, 0.0  ;;  %v2819_v53 = vmul.f32 %v5914_v24, %v5914_v24  ;;  %v2748_v54 = vpop.f32.mrb[35].mxu1  ;;  %v2789_v20 = vpop.f32.mrb[15].mxu0  ;;  %v2821_v19 = vmul.f32 %v5937_v30, %v5937_v30  ;;  %v4853_v51 = vld [vmem:[%s6084_s20 + $0xc8] sm:$0xff]  }
 0x9b5   :  { %v2792_v55 = vrot.slane %v2791_v52, 4  ;;  %v2798_v56 = vsel %vm632_vm0, %v5916_v48, 0.0  ;;  %v2820_v57 = vmul.f32 %v5916_v48, %v5916_v48  ;;  %v2812_v61 = vsel %vm632_vm0, %v5918_v49, 0.0  ;;  %v4854_v54 = vld [vmem:[%s6084_s20 + $0x88] sm:$0xff]  }
 0x9b6   :  { %v2823_v58 = vsel %vm632_vm0, %v2819_v53, 0.0  ;;  %v2799_v59 = vrot.slane %v2798_v56, 4  ;;  %v2813_v46 = vrot.slane %v2812_v61, 4  ;;  %v2822_v26 = vmul.f32 %v5918_v49, %v5918_v49 }
 0x9b7   :  { %v2793_v44 = vadd.f32 %v2792_v55, %v2791_v52  ;;  %v2824_v63 = vrot.slane %v2823_v58, 4  ;;  %v2830_v1 = vsel %vm632_vm0, %v2820_v57, 0.0  ;;  %v2837_v53 = vsel %vm632_vm0, %v2821_v19, 0.0  ;;  %v4855_v55 = vld [vmem:[%s6084_s20 + $0xd0] sm:$0xff]  }
 0x9b8   :  { %v2800_v0 = vadd.f32 %v2799_v59, %v2798_v56  ;;  %v2831_v5 = vrot.slane %v2830_v1, 4  ;;  %v2814_v6 = vadd.f32 %v2813_v46, %v2812_v61  ;;  %v2844_v7 = vsel %vm632_vm0, %v2822_v26, 0.0  ;;  %v4857_v59 = vld [vmem:[%s6084_s20 + $0xd8] sm:$0xff]   ;;  %v4860_v26 = vld [vmem:[%s6084_s20 + $0xa0] sm:$0xff]  }
 0x9b9   :  { %v2794_v2 = vrot.slane %v2793_v44, 2  ;;  %v2825_v3 = vadd.f32 %v2824_v63, %v2823_v58  ;;  %v2845_v14 = vrot.slane %v2844_v7, 4  ;;  %v2805_v20 = vsel %vm632_vm0, %v5937_v30, 0.0  ;;  %v4856_v58 = vld [vmem:[%s6084_s20 + $0x90] sm:$0xff]   ;;  %v4858_v63 = vld [vmem:[%s6084_s20 + $0x98] sm:$0xff]  }
 0x9ba   :  { %v2801_v4 = vrot.slane %v2800_v0, 2  ;;  %v2832_v11 = vadd.f32 %v2831_v5, %v2830_v1  ;;  %v2815_v13 = vrot.slane %v2814_v6, 2  ;;  %v2838_v56 = vrot.slane %v2837_v53, 4  ;;  %v4862_v5 = vld [vmem:[%s6084_s20 + $0xa8] sm:$0xff]  }
 0x9bb   :  { %v2795_v8 = vadd.f32 %v2794_v2, %v2793_v44  ;;  %v2826_v9 = vrot.slane %v2825_v3, 2  ;;  %v2846_v21 = vadd.f32 %v2845_v14, %v2844_v7  ;;  %v2806_v57 = vrot.slane %v2805_v20, 4  ;;  %v4861_v2 = vld [vmem:[%s6084_s20 + $0xe8] sm:$0xff]   ;;  %v4866_v14 = vld [vmem:[%s6084_s20 + $0xb8] sm:$0xff]  }
 0x9bc   :  { %v2802_v10 = vadd.f32 %v2801_v4, %v2800_v0  ;;  %v2833_v17 = vrot.slane %v2832_v11, 2  ;;  %v2816_v18 = vadd.f32 %v2815_v13, %v2814_v6  ;;  %v2839_v61 = vadd.f32 %v2838_v56, %v2837_v53  ;;  %v4859_v0 = vld [vmem:[%s6084_s20 + $0xe0] sm:$0xff]   ;;  %v4863_v6 = vld [vmem:[%s6084_s20 + $0xf0] sm:$0xff]  }
 0x9bd   :  { %v2827_v15 = vadd.f32 %v2826_v9, %v2825_v3  ;;  %v2796_v22 = vrot.slane %v2795_v8, 1  ;;  %v2847_v28 = vrot.slane %v2846_v21, 2  ;;  %v2807_v44 = vadd.f32 %v2806_v57, %v2805_v20  ;;  %v4864_v9 = vld [vmem:[%s6084_s20 + $0xb0] sm:$0xff]  }
 0x9be   :  { %v2803_v25 = vrot.slane %v2802_v10, 1  ;;  %v2834_v27 = vadd.f32 %v2833_v17, %v2832_v11  ;;  %v2817_v31 = vrot.slane %v2816_v18, 1  ;;  %v2840_v1 = vrot.slane %v2839_v61, 2  ;;  %v3233_v17 = vld [vmem:[%s6085_s21] sm:$0xff] }
 0x9bf   :  { %v2828_v23 = vrot.slane %v2827_v15, 1  ;;  %v2848_v32 = vadd.f32 %v2847_v28, %v2846_v21  ;;  %v2797_v35 = vadd.f32 %v2796_v22, %v2795_v8  ;;  %v2808_v46 = vrot.slane %v2807_v44, 2 }
 0x9c0   :  { %v2835_v33 = vrot.slane %v2834_v27, 1  ;;  %v2804_v36 = vadd.f32 %v2803_v25, %v2802_v10  ;;  %v2818_v62 = vadd.f32 %v2817_v31, %v2816_v18  ;;  %v2841_v3 = vadd.f32 %v2840_v1, %v2839_v61  ;;  %v4865_v10 = vld [vmem:[%s6084_s20 + $0xf8] sm:$0xff]   ;;  %v4879_v1 = vld [vmem:[#allocation7 + $0x24] ss:$8 sps:$4 sm:$0xff]  }
 0x9c1   :  { %v2829_v29 = vadd.f32 %v2828_v23, %v2827_v15  ;;  %v2849_v60 = vrot.slane %v2848_v32, 1  ;;  %v2809_v4 = vadd.f32 %v2808_v46, %v2807_v44  ;;  %v4240_v18 = vcombine.high %v3233_v17, %v3233_v17  ;;  %v3234_v23 = vld [vmem:[%s6085_s21 + $0x8] sm:$0xff] }
 0x9c2   :  { %v2836_v42 = vadd.f32 %v2835_v33, %v2834_v27  ;;  %v2842_v7 = vrot.slane %v2841_v3, 1  ;;  %v4239_v21 = vcombine.low %v3233_v17, %v3233_v17  ;;  %v4242_v25 = vcombine.high %v3234_v23, %v3234_v23  ;;  %v4873_v44 = vld [vmem:[#allocation7 + $0x4] ss:$8 sps:$4 sm:$0xff]   ;;  %v4877_v46 = vld [vmem:[#allocation7 + $0x20] ss:$8 sps:$4 sm:$0xff]  }
 0x9c3   :  { %v2851_v37 = vsel %vm693_vm1, %v2797_v35, %v2829_v29  ;;  %v2850_v43 = vadd.f32 %v2849_v60, %v2848_v32  ;;  %v2810_v8 = vrot.slane %v2809_v4, 1  ;;  %4243 = vmatprep.subr.msk.bf16.mxu0 %vm1092_vm2, %v4240_v18  ;;  %v4241_v56 = vcombine.low %v3234_v23, %v3234_v23  ;;  %v4906_v17 = vld [vmem:[#allocation7 + $0xb4] ss:$8 sps:$4 sm:$0xff]   ;;  %v4904_v18 = vld [vmem:[#allocation7 + $0xb0] ss:$8 sps:$4 sm:$0xff]  }
 0x9c4   :  { %v2852_v41 = vsel %vm693_vm1, %v2804_v36, %v2836_v42  ;;  %v2855_v47 = vpack.c.bf16 %v2851_v37, %v2851_v37  ;;  %v2843_v11 = vadd.f32 %v2842_v7, %v2841_v3  ;;  %v3249_v22 = vsel %vm1092_vm2, %v4239_v21, 0  ;;  %v4885_v3 = vld [vmem:[#allocation7 + $0x44] ss:$8 sps:$4 sm:$0xff]   ;;  %v4889_v7 = vld [vmem:[#allocation7 + $0x60] ss:$8 sps:$4 sm:$0xff]  }
 0x9c5   :  { %v2856_v34 = vpack.c.bf16 %v2852_v41, %v2852_v41  ;;  %v2854_v50 = vsel %vm693_vm1, %v2818_v62, %v2850_v43  ;;  %v2811_v13 = vadd.f32 %v2810_v8, %v2809_v4  ;;  %3261 = vmatpush1.bf16.msra.mxu0 %v3249_v22  ;;  %v3255_v61 = vsel %vm1092_vm2, %v4241_v56, 0  ;;  %v4883_v4 = vld [vmem:[#allocation7 + $0x40] ss:$8 sps:$4 sm:$0xff]   ;;  %v4894_v8 = vld [vmem:[#allocation7 + $0x74] ss:$8 sps:$4 sm:$0xff]  }
 0x9c6   :  { %v2858_v52 = vpack.c.bf16 %v2854_v50, %v2854_v50  ;;  %4245 = vmatprep.subr.msk.bf16.mxu0 %vm1092_vm2, %v4242_v25  ;;  %v4909_v21 = vld [vmem:[#allocation7 + $0xc4] ss:$8 sps:$4 sm:$0xff]   ;;  %v4907_v22 = vld [vmem:[#allocation7 + $0xc0] ss:$8 sps:$4 sm:$0xff]   ;;  %v4912_v23 = vld [vmem:[#allocation7 + $0xd4] ss:$8 sps:$4 sm:$0xff]  }
 0x9c7   :  { %3147 = vmatprep.mubr.bf16.mxu1 %v2856_v34  ;;  %v2853_v15 = vsel %vm693_vm1, %v2811_v13, %v2843_v11  ;;  %v4895_v11 = vld [vmem:[#allocation7 + $0x80] ss:$8 sps:$4 sm:$0xff]   ;;  %v4900_v13 = vld [vmem:[#allocation7 + $0x94] ss:$8 sps:$4 sm:$0xff]   ;;  %v4910_v25 = vld [vmem:[#allocation7 + $0xd0] ss:$8 sps:$4 sm:$0xff]  }
 0x9c8   :  { %3148 = vmatmul.mubr.bf16.vlgmr.msra.gmra.mrb[36].mxu1 %v2855_v47  ;;  %v2857_v16 = vpack.c.bf16 %v2853_v15, %v2853_v15  ;;  %v4903_v15 = vld [vmem:[#allocation7 + $0xa4] ss:$8 sps:$4 sm:$0xff]  }
 0x9c9   :  { %4425 = vmatpush3.bf16.msra.mxu1 %v4852_v45  ;;  %3187 = vmatprep.mubr.bf16.mxu1 %v2858_v52 }
 0x9ca   :  { %4426 = vmatprep.subr.bf16.mxu1 %v4853_v51  ;;  %v3201_v51 = vld [vmem:[%s6086_s22] sm:$0x1]  ;;  %s5111_s22 = smov [#allocation8]  }
 0x9cd   :  { %4427 = vmatpush3.bf16.msra.mxu1 %v4854_v54  ;;  %v3222_v54 = vld [vmem:[%s6087_s23] sm:$0x1]  ;;  %s3907_s23 = sshll.u32 %s5111_s22, 4  ;;  %s3908_s23 = int_to_ptr.vmem [resolvable:$true] %s3907_s23 }
 0x9ce   :  { %4428 = vmatprep.subr.bf16.mxu1 %v4855_v55  ;;  %s5049_s10 = scalar_lea.vmem %s3908_s23, 32  ;;  %p5054_p11 = scmp.lt.s32.totalorder %s3908_s23, %s3908_s23 }
 0x9cf   :  { %p5050_p10 = scmp.ne.s32.totalorder %s3908_s23, %s5049_s10  ;;  %p5055_p12 = scmp.lt.s32.totalorder %s5049_s10, %s5049_s10 }
 0x9d1   :  { %4429 = vmatpush3.bf16.msra.mxu1 %v4856_v58  ;;  %p5056_p13 = por %p5055_p12, %p5054_p11 }
 0x9d2   :  { %4430 = vmatprep.subr.bf16.mxu1 %v4857_v59 }
 0x9d3   :  { %p5057_p0 = pnand %p5056_p13, %p5050_p10 }
 0x9d5   :  { %4431 = vmatpush3.bf16.msra.mxu1 %v4858_v63  ;;  %v4876_v63 = vld [vmem:[#allocation7 + $0x14] ss:$8 sps:$4 sm:$0xff]  }
 0x9d6   :  { %4432 = vmatprep.subr.bf16.mxu1 %v4859_v0  ;;  %v4874_v0 = vld [vmem:[#allocation7 + $0x10] ss:$8 sps:$4 sm:$0xff]  }
 0x9d9   :  { %4433 = vmatpush3.bf16.msra.mxu1 %v4860_v26  ;;  %v4882_v26 = vld [vmem:[#allocation7 + $0x34] ss:$8 sps:$4 sm:$0xff]  }
 0x9da   :  { %4434 = vmatprep.subr.bf16.mxu1 %v4861_v2  ;;  %v4880_v2 = vld [vmem:[#allocation7 + $0x30] ss:$8 sps:$4 sm:$0xff]  }
 0x9dd   :  { %4435 = vmatpush3.bf16.msra.mxu1 %v4862_v5  ;;  %v4886_v5 = vld [vmem:[#allocation7 + $0x50] ss:$8 sps:$4 sm:$0xff]  }
 0x9de   :  { %4436 = vmatprep.subr.bf16.mxu1 %v4863_v6  ;;  %v4891_v6 = vld [vmem:[#allocation7 + $0x64] ss:$8 sps:$4 sm:$0xff]  }
 0x9e1   :  { %4437 = vmatpush3.bf16.msra.mxu1 %v4864_v9  ;;  %v4892_v9 = vld [vmem:[#allocation7 + $0x70] ss:$8 sps:$4 sm:$0xff]  }
 0x9e2   :  { %4438 = vmatprep.subr.bf16.mxu1 %v4865_v10  ;;  %v4897_v10 = vld [vmem:[#allocation7 + $0x84] ss:$8 sps:$4 sm:$0xff]  }
 0x9e5   :  { %4439 = vmatpush3.bf16.msra.mxu1 %v4866_v14  ;;  %v4898_v14 = vld [vmem:[#allocation7 + $0x90] ss:$8 sps:$4 sm:$0xff]  }
 0x9e8   :  { %3188 = vmatmul.mubr.bf16.vlgmr.msra.gmra.mrb[40].mxu1 %v2857_v16  ;;  %v4901_v16 = vld [vmem:[#allocation7 + $0xa0] ss:$8 sps:$4 sm:$0xff]  }
 0xa9b   :  { %v4418_v27 = vpop.f32.mrb[36].mxu1 }
 0xa9c   :  { %v4419_v28 = vpop.f32.mrb[37].mxu1 }
 0xa9d   :  { %v4420_v29 = vadd.f32 %v4419_v28, %v4418_v27  ;;  %v4421_v31 = vpop.f32.mrb[38].mxu1  ;;  %v4915_v27 = vld [vmem:[#allocation7 + $0xe4] ss:$8 sps:$4 sm:$0xff]   ;;  %v4913_v28 = vld [vmem:[#allocation7 + $0xe0] ss:$8 sps:$4 sm:$0xff]  }
 0xa9e   :  { %v4422_v32 = vpop.f32.mrb[39].mxu1  ;;  %v4916_v31 = vld [vmem:[#allocation7 + $0xf0] ss:$8 sps:$4 sm:$0xff]  }
 0xa9f   :  { %v4921_v32 = vld [vmem:[#allocation7 + $0x104] ss:$8 sps:$4 sm:$0xff]  }
 0xabb   :  { %v4440_v33 = vpop.f32.mrb[40].mxu1 }
 0xabc   :  { %v4441_v35 = vpop.f32.mrb[41].mxu1 }
 0xabd   :  { %v4442_v36 = vadd.f32 %v4441_v35, %v4440_v33  ;;  %v4443_v42 = vpop.f32.mrb[42].mxu1 }
 0xabe   :  { %v4444_v60 = vpop.f32.mrb[43].mxu1 }
 0xabf   :  { %v3190_v37 = vadd.f32 %v4442_v36, %v4420_v29  ;;  %v4918_v29 = vld [vmem:[#allocation7 + $0xf4] ss:$8 sps:$4 sm:$0xff]  }
 0xac1   :  { %v3195_v19 = vmul.f32 0.0078125, %v3190_v37 }
 0xac3   :  { %v3196_v41 = vmul.f32 %v3195_v19, %v3195_v19 }
 0xac5   :  { %v3198_v62 = vrot.slane %v3196_v41, 7 }
 0xac7   :  { %v3200_v43 = vsub.f32 %v3195_v19, %v3198_v62 }
 0xac9   :  { %v3202_v34 = vadd.f32 1e-05, %v3200_v43 }
 0xacb   :  { %4973 = vrsqrt.f32 %v3202_v34 }
 0xad5   :  { %v4974_v45 = vpop.eup %4973 }
 0xad6   :  { %v3211_v47 = vrot.slane %v4974_v45, %v5653_v39 }
 0xad8   :  { %v3212_v50 = vcombine.high %v3211_v47, %v3211_v47 }
 0xada   :  { %v3219_v52 = vrot.slane %v3212_v50, %v5653_v39  ;;  %v4871_v39 = vld [vmem:[#allocation7] ss:$8 sps:$4 sm:$0xff]  }
 0xadc   :  { %v3221_v53 = vmul.f32 %v3219_v52, %v3201_v51 }
 0xade   :  { %v3223_v20 = vmul.f32 %v3221_v53, %v3195_v19 }
 0xae0   :  { %v3224_v55 = vsub.f32 %v3222_v54, %v3223_v20 }
 0xae2   :  { %v3229_v57 = vrot.slane %v3224_v55, %v5592_v38  ;;  %v4919_v55 = vld [vmem:[#allocation7 + $0x100] ss:$8 sps:$4 sm:$0xff]  }
 0xae4   :  { %v3231_v58 = vsel %vm693_vm1, %v3221_v53, %v3229_v57  ;;  %v4924_v57 = vld [vmem:[#allocation7 + $0x114] ss:$8 sps:$4 sm:$0xff]  }
 0xae5   :  { %v3232_v59 = vpack.c.bf16 %v3231_v58, %v3231_v58 }
 0xae7   :  { %4244 = vmatmul.mubr.msk.bf16.vlgmr.msra.gmra.mrb[16].mxu0 %vm1088_vm3, %v3232_v59 }
 0xae8   :  { %3302 = vmatpush1.bf16.msra.mxu0 %v3255_v61  ;;  %3333 = vmatprep.mubr.bf16.mxu0 %v5108_v12  ;;  %v4888_v12 = vld [vmem:[#allocation7 + $0x54] ss:$8 sps:$4 sm:$0xff]   ;;  %v4922_v61 = vld [vmem:[#allocation7 + $0x110] ss:$8 sps:$4 sm:$0xff]  }
 0xae9   :  { %3786 = vmatprep.subr.bf16.mxu0 %v4873_v44  ;;  %v4927_v44 = vld [vmem:[#allocation7 + $0x124] ss:$8 sps:$4 sm:$0xff]  }
 0xaef   :  { %4246 = vmatmul.mubr.msk.bf16.vlgmr.msra.gmra.mrb[20].mxu0 %vm1088_vm3, %v3232_v59 }
 0xaf0   :  { %3787 = vmatpush1.bf16.msra.mxu0 %v4871_v39 }
 0xaf1   :  { %3788 = vmatprep.subr.bf16.mxu0 %v4876_v63  ;;  %v4925_v63 = vld [vmem:[#allocation7 + $0x120] ss:$8 sps:$4 sm:$0xff]  }
 0xaf4   :  { %3789 = vmatpush1.bf16.msra.mxu0 %v4874_v0 }
 0xaf5   :  { %3790 = vmatprep.subr.bf16.mxu0 %v4879_v1  ;;  %v4930_v1 = vld [vmem:[#allocation7 + $0x134] ss:$8 sps:$4 sm:$0xff]  }
 0xaf8   :  { %3791 = vmatpush1.bf16.msra.mxu0 %v4877_v46  ;;  %v4928_v46 = vld [vmem:[#allocation7 + $0x130] ss:$8 sps:$4 sm:$0xff]  }
 0xaf9   :  { %3792 = vmatprep.subr.bf16.mxu0 %v4882_v26  ;;  %v4931_v26 = vld [vmem:[#allocation7 + $0x140] ss:$8 sps:$4 sm:$0xff]  }
 0xafc   :  { %3793 = vmatpush1.bf16.msra.mxu0 %v4880_v2  ;;  %v4936_v2 = vld [vmem:[#allocation7 + $0x154] ss:$8 sps:$4 sm:$0xff]  }
 0xafd   :  { %3794 = vmatprep.subr.bf16.mxu0 %v4885_v3  ;;  %v4934_v3 = vld [vmem:[#allocation7 + $0x150] ss:$8 sps:$4 sm:$0xff]  }
 0xb00   :  { %3795 = vmatpush1.bf16.msra.mxu0 %v4883_v4  ;;  %v4939_v4 = vld [vmem:[#allocation7 + $0x164] ss:$8 sps:$4 sm:$0xff]  }
 0xb01   :  { %3796 = vmatprep.subr.bf16.mxu0 %v4888_v12  ;;  %v4937_v12 = vld [vmem:[#allocation7 + $0x160] ss:$8 sps:$4 sm:$0xff]  }
 0xb04   :  { %3797 = vmatpush1.bf16.msra.mxu0 %v4886_v5  ;;  %v4942_v5 = vld [vmem:[#allocation7 + $0x174] ss:$8 sps:$4 sm:$0xff]  }
 0xb05   :  { %3798 = vmatprep.subr.bf16.mxu0 %v4891_v6  ;;  %v4940_v6 = vld [vmem:[#allocation7 + $0x170] ss:$8 sps:$4 sm:$0xff]  }
 0xb08   :  { %3799 = vmatpush1.bf16.msra.mxu0 %v4889_v7  ;;  %v4945_v7 = vld [vmem:[#allocation7 + $0x184] ss:$8 sps:$4 sm:$0xff]  }
 0xb09   :  { %3800 = vmatprep.subr.bf16.mxu0 %v4894_v8  ;;  %v4943_v8 = vld [vmem:[#allocation7 + $0x180] ss:$8 sps:$4 sm:$0xff]  }
 0xb0c   :  { %3801 = vmatpush1.bf16.msra.mxu0 %v4892_v9  ;;  %v4948_v9 = vld [vmem:[#allocation7 + $0x194] ss:$8 sps:$4 sm:$0xff]  }
 0xb0d   :  { %3802 = vmatprep.subr.bf16.mxu0 %v4897_v10  ;;  %v4946_v10 = vld [vmem:[#allocation7 + $0x190] ss:$8 sps:$4 sm:$0xff]  }
 0xb10   :  { %3803 = vmatpush1.bf16.msra.mxu0 %v4895_v11  ;;  %v4951_v11 = vld [vmem:[#allocation7 + $0x1a4] ss:$8 sps:$4 sm:$0xff]  }
 0xb11   :  { %3804 = vmatprep.subr.bf16.mxu0 %v4900_v13  ;;  %v4949_v13 = vld [vmem:[#allocation7 + $0x1a0] ss:$8 sps:$4 sm:$0xff]  }
 0xb14   :  { %3805 = vmatpush1.bf16.msra.mxu0 %v4898_v14  ;;  %v4954_v14 = vld [vmem:[#allocation7 + $0x1b4] ss:$8 sps:$4 sm:$0xff]  }
 0xb15   :  { %3806 = vmatprep.subr.bf16.mxu0 %v4903_v15  ;;  %v4952_v15 = vld [vmem:[#allocation7 + $0x1b0] ss:$8 sps:$4 sm:$0xff]  }
 0xb18   :  { %3807 = vmatpush1.bf16.msra.mxu0 %v4901_v16  ;;  %v4957_v16 = vld [vmem:[#allocation7 + $0x1c4] ss:$8 sps:$4 sm:$0xff]  }
 0xb19   :  { %3808 = vmatprep.subr.bf16.mxu0 %v4906_v17  ;;  %v4955_v17 = vld [vmem:[#allocation7 + $0x1c0] ss:$8 sps:$4 sm:$0xff]  }
 0xb1c   :  { %3809 = vmatpush1.bf16.msra.mxu0 %v4904_v18 }
 0xb1d   :  { %3810 = vmatprep.subr.bf16.mxu0 %v4909_v21  ;;  %v4960_v21 = vld [vmem:[#allocation7 + $0x1d4] ss:$8 sps:$4 sm:$0xff]  }
 0xb20   :  { %3811 = vmatpush1.bf16.msra.mxu0 %v4907_v22  ;;  %v4958_v22 = vld [vmem:[#allocation7 + $0x1d0] ss:$8 sps:$4 sm:$0xff]  }
 0xb21   :  { %3812 = vmatprep.subr.bf16.mxu0 %v4912_v23 }
 0xb24   :  { %3813 = vmatpush1.bf16.msra.mxu0 %v4910_v25  ;;  %v4963_v25 = vld [vmem:[#allocation7 + $0x1e4] ss:$8 sps:$4 sm:$0xff]  }
 0xb25   :  { %3814 = vmatprep.subr.bf16.mxu0 %v4915_v27 }
 0xb28   :  { %3815 = vmatpush1.bf16.msra.mxu0 %v4913_v28  ;;  %v4961_v28 = vld [vmem:[#allocation7 + $0x1e0] ss:$8 sps:$4 sm:$0xff]  }
 0xb29   :  { %3816 = vmatprep.subr.bf16.mxu0 %v4918_v29 }
 0xb2c   :  { %3817 = vmatpush1.bf16.msra.mxu0 %v4916_v31  ;;  %v4966_v31 = vld [vmem:[#allocation7 + $0x1f4] ss:$8 sps:$4 sm:$0xff]  }
 0xb2d   :  { %3827 = vmatprep.subr.bf16.mxu0 %v4921_v32  ;;  %v4964_v32 = vld [vmem:[#allocation7 + $0x1f0] ss:$8 sps:$4 sm:$0xff]  }
 0xbba   :  { %v3294_v33 = vpop.f32.mrb[16].mxu0 }
 0xbbb   :  { %v3345_v35 = vrot.slane %v3294_v33, %v5592_v38  ;;  %v3296_v36 = vpop.f32.mrb[17].mxu0  ;;  %v3365_v19 = vrot.slane %v3294_v33, %v5598_v40 }
 0xbbc   :  { %v3349_v42 = vrot.slane %v3296_v36, %v5592_v38  ;;  %v3298_v60 = vpop.f32.mrb[18].mxu0  ;;  %v3369_v43 = vrot.slane %v3296_v36, %v5598_v40 }
 0xbbd   :  { %v3358_v37 = vmul.f32 %v3345_v35, %v5914_v24  ;;  %v3299_v41 = vpop.f32.mrb[19].mxu0 }
 0xbbe   :  { %v3359_v62 = vmul.f32 %v3349_v42, %v5916_v48 }
 0xbbf   :  { %v3378_v34 = vadd.f32 %v3365_v19, %v3358_v37 }
 0xbc0   :  { %v3379_v45 = vadd.f32 %v3369_v43, %v3359_v62 }
 0xbc1   :  { %v3382_v47 = vmax.f32 %v3378_v34, 0.0 }
 0xbc2   :  { %v3383_v50 = vmax.f32 %v3379_v45, 0.0  ;;  %v6022_v51 = vpop.f32.mrb[20].mxu0 }
 0xbc3   :  { %v3337_v52 = vpop.f32.mrb[21].mxu0  ;;  %v3386_v24 = vpack.c.bf16 %v3382_v47, %v3382_v47  ;;  %v3353_v18 = vrot.slane %v6022_v51, %v5592_v38  ;;  %v3373_v27 = vrot.slane %v6022_v51, %v5598_v40 }
 0xbc4   :  { %v3357_v53 = vrot.slane %v3337_v52, %v5592_v38  ;;  %v3339_v54 = vpop.f32.mrb[22].mxu0  ;;  %v3387_v20 = vpack.c.bf16 %v3383_v50, %v3383_v50  ;;  %v3377_v48 = vrot.slane %v3337_v52, %v5598_v40 }
 0xbc5   :  { %v3340_v56 = vpop.f32.mrb[23].mxu0  ;;  %v3360_v23 = vmul.f32 %v3353_v18, %v5937_v30 }
 0xbc6   :  { %v3361_v58 = vmul.f32 %v3357_v53, %v5918_v49  ;;  %3818 = vmatprep.mubr.bf16.mxu0 %v3387_v20  ;;  %v4933_v49 = vld [vmem:[#allocation7 + $0x144] ss:$8 sps:$4 sm:$0xff]  }
 0xbc7   :  { %3819 = vmatmul.mubr.bf16.vlgmr.msra.gmra.mrb[24].mxu0 %v3386_v24  ;;  %v3380_v29 = vadd.f32 %v3373_v27, %v3360_v23 }
 0xbc8   :  { %v3381_v59 = vadd.f32 %v3377_v48, %v3361_v58  ;;  %3828 = vmatpush1.bf16.msra.mxu0 %v4919_v55 }
 0xbc9   :  { %3829 = vmatprep.subr.bf16.mxu0 %v4924_v57  ;;  %v3384_v33 = vmax.f32 %v3380_v29, 0.0 }
 0xbca   :  { %v3385_v39 = vmax.f32 %v3381_v59, 0.0 }
 0xbcb   :  { %v3388_v35 = vpack.c.bf16 %v3384_v33, %v3384_v33 }
 0xbcc   :  { %3830 = vmatpush1.bf16.msra.mxu0 %v4922_v61  ;;  %v3389_v0 = vpack.c.bf16 %v3385_v39, %v3385_v39 }
 0xbcd   :  { %3831 = vmatprep.subr.bf16.mxu0 %v4927_v44 }
 0xbce   :  { %3859 = vmatprep.mubr.bf16.mxu0 %v3389_v0 }
 0xbd0   :  { %3832 = vmatpush1.bf16.msra.mxu0 %v4925_v63 }
 0xbd1   :  { %3833 = vmatprep.subr.bf16.mxu0 %v4930_v1 }
 0xbd4   :  { %3834 = vmatpush1.bf16.msra.mxu0 %v4928_v46 }
 0xbd5   :  { %3835 = vmatprep.subr.bf16.mxu0 %v4933_v49 }
 0xbd8   :  { %3836 = vmatpush1.bf16.msra.mxu0 %v4931_v26 }
 0xbd9   :  { %3837 = vmatprep.subr.bf16.mxu0 %v4936_v2 }
 0xbdc   :  { %3838 = vmatpush1.bf16.msra.mxu0 %v4934_v3 }
 0xbdd   :  { %3839 = vmatprep.subr.bf16.mxu0 %v4939_v4 }
 0xbe0   :  { %3840 = vmatpush1.bf16.msra.mxu0 %v4937_v12 }
 0xbe1   :  { %3841 = vmatprep.subr.bf16.mxu0 %v4942_v5 }
 0xbe4   :  { %3842 = vmatpush1.bf16.msra.mxu0 %v4940_v6 }
 0xbe5   :  { %3843 = vmatprep.subr.bf16.mxu0 %v4945_v7 }
 0xbe8   :  { %3844 = vmatpush1.bf16.msra.mxu0 %v4943_v8 }
 0xbe9   :  { %3845 = vmatprep.subr.bf16.mxu0 %v4948_v9 }
 0xbec   :  { %3846 = vmatpush1.bf16.msra.mxu0 %v4946_v10 }
 0xbed   :  { %3847 = vmatprep.subr.bf16.mxu0 %v4951_v11 }
 0xbf0   :  { %3848 = vmatpush1.bf16.msra.mxu0 %v4949_v13 }
 0xbf1   :  { %3849 = vmatprep.subr.bf16.mxu0 %v4954_v14 }
 0xbf4   :  { %3850 = vmatpush1.bf16.msra.mxu0 %v4952_v15 }
 0xbf5   :  { %3851 = vmatprep.subr.bf16.mxu0 %v4957_v16 }
 0xbf8   :  { %3852 = vmatpush1.bf16.msra.mxu0 %v4955_v17 }
 0xbf9   :  { %3853 = vmatprep.subr.bf16.mxu0 %v4960_v21 }
 0xbfc   :  { %3854 = vmatpush1.bf16.msra.mxu0 %v4958_v22 }
 0xbfd   :  { %3855 = vmatprep.subr.bf16.mxu0 %v4963_v25 }
 0xc00   :  { %3856 = vmatpush1.bf16.msra.mxu0 %v4961_v28 }
 0xc01   :  { %3857 = vmatprep.subr.bf16.mxu0 %v4966_v31 }
 0xc04   :  { %3858 = vmatpush1.bf16.msra.mxu0 %v4964_v32 }
 0xc07   :  { %3860 = vmatmul.mubr.bf16.vlgmr.msra.gmra.mrb[24].mxu0 %v3388_v35 }
 0xc08   :  { %5060 = shalt.err (!%p5057_p0)
}
 0xc09   :  { %s5061_s17 = scalar_lea.hbm %s6091_s27, 32 }
 0xc0a   :  { %p5062_p1 = scmp.ne.s32.totalorder %s6091_s27, %s5061_s17  ;;  %p5065_p2 = scmp.lt.u32.totalorder %s5061_s17, %s6091_s27 }
 0xc0c   :  { %p5067_p3 = pnand %p5065_p2, %p5062_p1 }
 0xc0e   :  { %5070 = shalt.err (!%p5067_p3)
}
 0xc0f   :  { %3910 = dma.vmem_to_hbm [thread:$0]  %s3908_s23, 32, %s6091_s27, [#allocation4]  }
 0xc10   :  { %s5071_s19 = scalar_lea.vmem %s3918_s26, 32  ;;  %p5076_p5 = scmp.lt.s32.totalorder %s3918_s26, %s3918_s26 }
 0xc11   :  { %p5072_p4 = scmp.ne.s32.totalorder %s3918_s26, %s5071_s19  ;;  %p5077_p6 = scmp.lt.s32.totalorder %s5071_s19, %s5071_s19 }
 0xc13   :  { %p5078_p7 = por %p5077_p6, %p5076_p5 }
 0xc15   :  { %p5079_p8 = pnand %p5078_p7, %p5072_p4 }
 0xc17   :  { %5082 = shalt.err (!%p5079_p8)
}
 0xc18   :  { %s5083_s4 = scalar_lea.hbm %s6092_s28, 32 }
 0xc19   :  { %p5084_p9 = scmp.ne.s32.totalorder %s6092_s28, %s5083_s4  ;;  %p5087_p10 = scmp.lt.u32.totalorder %s5083_s4, %s6092_s28 }
 0xc1b   :  { %p5089_p11 = pnand %p5087_p10, %p5084_p9 }
 0xc1d   :  { %5092 = shalt.err (!%p5089_p11)
}
 0xc1e   :  { %3920 = dma.vmem_to_hbm [thread:$0]  %s3918_s26, 32, %s6092_s28, [#allocation10]   ;;  %v3454_v30 = vld [vmem:[%s6089_s25] sm:$0x3] }
 0xc1f   :  { %v3459_v36 = vrot.slane %v3454_v30, %v5592_v38  ;;  %v3463_v42 = vrot.slane %v3454_v30, %v5598_v40  ;;  %s6126_s21 = sld [smem:[#allocation28_spill]] }
 0xcda   :  { %v3861_v60 = vpop.f32.mrb[24].mxu0 }
 0xcdb   :  { %v4448_v37 = vadd.f32 %v3861_v60, %v3459_v36  ;;  %v3863_v19 = vpop.f32.mrb[25].mxu0 }
 0xcdc   :  { %v4449_v41 = vadd.f32 %v3863_v19, %v3463_v42  ;;  %v3865_v62 = vpop.f32.mrb[26].mxu0 }
 0xcdd   :  { %v4311_v43 = vmul.f32 -1.442695, %v4448_v37  ;;  %v3866_v34 = vpop.f32.mrb[27].mxu0 }
 0xcde   :  { %v4312_v45 = vmul.f32 -1.442695, %v4449_v41 }
 0xcdf   :  { %4975 = vpow2.f32 %v4311_v43 }
 0xce0   :  { %4977 = vpow2.f32 %v4312_v45 }
 0xce9   :  { %v4976_v47 = vpop.eup %4975 }
 0xcea   :  { %v4978_v50 = vpop.eup %4977  ;;  %v3874_v51 = vadd.f32 1.0, %v4976_v47 }
 0xceb   :  { %v3875_v52 = vadd.f32 1.0, %v4978_v50 }
 0xcec   :  { %4979 = vrcp.f32 %v3874_v51 }
 0xced   :  { %4981 = vrcp.f32 %v3875_v52 }
 0xcf6   :  { %v4980_v53 = vpop.eup %4979 }
 0xcf7   :  { %v4982_v38 = vpop.eup %4981 }
 0xcf8   :  { %v3882_v54 = vcombine.low %v4980_v53, %v4982_v38 }
 0xcfa   :  { %4313 = vst.sshfl [vmem:[%s6126_s21] sm:$0x33 pattern:$0x76325410] %v3882_v54 }
 0xcfb   :  { %5097 = dma.done.wait [#allocation4], 32  }
 0xcfc   :  { %5098 = vsyncadd [#allocation4], 4294967264 }
 0xcfd   :  { %5099 = dma.done.wait [#allocation10], 32  }
 0xcfe   :  { %5100 = vsyncadd [#allocation10], 4294967264 }
 0xcff   :  { %3929 = vsyncpa [#allocation3], 1 }
 0xd00   :  { %3930 = vsyncpa [#allocation6], 1 }
 0xd01   :  { %3931 = vsyncpa [#allocation4], 1 }
 0xd02   :  { %3932 = vsyncpa [#allocation10], 1 }

</bundles_post_ra>
